<compile_context>
chip_gen: v7x
topology: tpu7x:2x2x1
jax: 0.10.0
libtpu: 0.0.40
codegen_flags: <defaults>
</compile_context>

<pallas_src>
import functools

import jax
import jax.numpy as jnp
import numpy as np
from jax.experimental import pallas as pl
from jax.experimental.pallas import tpu as pltpu

_LN_EPS = 1e-6       # nn.LayerNorm(d_model, eps=1e-6) in the reference repo
_MASK_FILL = -1e9    # attn.masked_fill(mask == 0, -1e9)


def _layer_norm(x, gamma, beta, eps):
    mean = jnp.mean(x, axis=-1, keepdims=True)
    var = jnp.mean((x - mean) ** 2, axis=-1, keepdims=True)
    return (x - mean) * jax.lax.rsqrt(var + eps) * gamma + beta


# ---------------------------------------------------------------------------
# Fused encoder layer kernel: one (batch, query-tile) grid step per invocation
# ---------------------------------------------------------------------------
def _encoder_layer_kernel(
        x_ref, mask_ref,
        wq_ref, bq_ref, wk_ref, bk_ref, wv_ref, bv_ref, wo_ref, bo_ref,
        g1_ref, be1_ref, w1_ref, b1_ref, w2_ref, b2_ref, g2_ref, be2_ref,
        o_ref, k_scr, v_scr, ctx_scr,
        *, n_head, eps):
    qi = pl.program_id(1)
    _, S, D = x_ref.shape            # x block is (1, S, D): full sequence
    tq = o_ref.shape[1]              # output block is (1, tq, D)
    dk = D // n_head
    scale = 1.0 / float(np.sqrt(dk))
    bf16, f32 = jnp.bfloat16, jnp.float32

    # --- K/V projections: once per batch element, kept resident in VMEM -----
    # The x block index does not change with qi, so its DMA is not re-issued;
    # recomputing K/V per query tile would waste 2*S*D^2 flops per extra tile.
    @pl.when(qi == 0)
    def _():
        xb = x_ref[0].astype(bf16)
        k = jnp.dot(xb, wk_ref[...], preferred_element_type=f32) + bk_ref[...]
        v = jnp.dot(xb, wv_ref[...], preferred_element_type=f32) + bv_ref[...]
        k_scr[...] = k.astype(bf16)
        v_scr[...] = v.astype(bf16)

    # --- Q projection for this query tile (1/sqrt(dk) folded in once) -------
    row0 = pl.multiple_of(qi * tq, tq)
    x_q = x_ref[0, pl.ds(row0, tq), :]                       # (tq, D) f32 residual
    q = jnp.dot(x_q.astype(bf16), wq_ref[...],
                preferred_element_type=f32) + bq_ref[...]
    q_b = (q * scale).astype(bf16)

    # Additive key-padding bias, hoisted out of the head loop:
    # 0 where mask == 1, -1e9 where mask == 0 (== masked_fill(mask==0, -1e9)).
    bias = (mask_ref[0] - 1.0) * (-_MASK_FILL)               # (1, S) f32

    # --- per-head masked softmax attention ----------------------------------
    # TODO(synk): flash-style KV tiling (running max/sum) would be required for
    # sequence lengths where the (S, D) K/V scratch or the (tq, S) score tile
    # no longer fit VMEM.
    k_all = k_scr[...]
    v_all = v_scr[...]
    for h in range(n_head):
        lo = h * dk
        s = jnp.einsum("qd,kd->qk", q_b[:, lo:lo + dk], k_all[:, lo:lo + dk],
                       preferred_element_type=f32) + bias     # (tq, S) f32 MXU
        e = jnp.exp(s - jnp.max(s, axis=-1, keepdims=True))   # f32, EUP
        denom = jnp.sum(e, axis=-1, keepdims=True)            # (tq, 1)
        ctx_h = jnp.dot(e.astype(bf16), v_all[:, lo:lo + dk],
                        preferred_element_type=f32)            # (tq, dk)
        # Normalize AFTER the PV matmul: a (tq, dk) scale instead of (tq, S),
        # with the divide on the EUP slot.
        ctx_scr[:, lo:lo + dk] = ctx_h * pl.reciprocal(denom, approx=True)

    # --- single full-width output projection + residual + LayerNorm ---------
    attn = jnp.dot(ctx_scr[...].astype(bf16), wo_ref[...],
                   preferred_element_type=f32) + bo_ref[...]
    y1 = _layer_norm(attn + x_q, g1_ref[...], be1_ref[...], eps)

    # --- fused position-wise FFN + residual + LayerNorm ----------------------
    # TODO(synk): for very large d_inner on v7x (64 MiB VMEM) the Dff dimension
    # would need an extra "arbitrary" grid axis with an (tq, D) accumulator.
    h1 = jnp.maximum(jnp.dot(y1.astype(bf16), w1_ref[...],
                             preferred_element_type=f32) + b1_ref[...], 0.0)
    y2 = jnp.dot(h1.astype(bf16), w2_ref[...],
                 preferred_element_type=f32) + b2_ref[...]
    o_ref[0] = _layer_norm(y2 + y1, g2_ref[...], be2_ref[...],
                           eps).astype(o_ref.dtype)


# ---------------------------------------------------------------------------
# Launch glue
# ---------------------------------------------------------------------------
def _pick_q_tile(seq, max_rows=256):
    if seq <= max_rows:
        return seq
    for t in (256, 128, 64, 32, 16, 8):
        if seq % t == 0:
            return t
    return seq


def _layer_vmem_limit_bytes(S, D, Dff, tq):
    # Rough per-kernel footprint with 2x headroom, clamped below every
    # generation's physical VMEM (64 MiB/TC on v7x; default scoped is 16-32).
    weights = (4 * D * D + 2 * D * Dff) * 2          # bf16 weights, resident
    biases = (6 * D + Dff) * 4 * 8                   # f32 biases/LN (padded)
    x_blk = 2 * S * D * 4                            # (1,S,D) f32 double-buffered
    o_blk = 2 * tq * D * 4
    scratch = 2 * S * D * 2 + tq * D * 4             # K,V bf16 + ctx f32
    live = 8 * tq * max(S, Dff) * 4                  # scores / exp / hidden temps
    est = 2 * (weights + biases + x_blk + o_blk + scratch + live)
    return int(min(max(est, 32 * 1024 * 1024), 64 * 1024 * 1024))


def _encoder_layer(x, mask, p, *, n_head, eps, q_block=None):
    B, S, D = x.shape
    Dff = p["w1"].shape[1]
    assert D % n_head == 0
    tq = q_block if q_block is not None else _pick_q_tile(S)
    assert S % tq == 0
    nq = S // tq

    kern = functools.partial(_encoder_layer_kernel, n_head=n_head, eps=eps)
    # Weights / biases / LN params: whole-array VMEM residency (no per-step
    # windowing, so no double-buffering of blocks whose index never changes).
    resident = lambda: pl.BlockSpec(memory_space=pltpu.MemorySpace.VMEM)

    return pl.pallas_call(
        kern,
        out_shape=jax.ShapeDtypeStruct((B, S, D), jnp.float32),
        grid=(B, nq),
        in_specs=[
            pl.BlockSpec((1, S, D), lambda b, q: (b, 0, 0)),   # x (full seq)
            pl.BlockSpec((1, 1, S), lambda b, q: (b, 0, 0)),   # key-padding mask
            resident(), resident(),                            # wq, bq
            resident(), resident(),                            # wk, bk
            resident(), resident(),                            # wv, bv
            resident(), resident(),                            # wo, bo
            resident(), resident(),                            # ln1 gamma, beta
            resident(), resident(),                            # w1, b1
            resident(), resident(),                            # w2, b2
            resident(), resident(),                            # ln2 gamma, beta
        ],
        out_specs=pl.BlockSpec((1, tq, D), lambda b, q: (b, q, 0)),
        scratch_shapes=[
            pltpu.VMEM((S, D), jnp.bfloat16),    # K, per batch element
            pltpu.VMEM((S, D), jnp.bfloat16),    # V, per batch element
            pltpu.VMEM((tq, D), jnp.float32),    # concat(per-head ctx)
        ],
        compiler_params=pltpu.CompilerParams(
            # Batch is megacore-parallel; the query-tile axis carries the K/V
            # scratch dependency (computed at qi == 0), so it must stay
            # "arbitrary".
            dimension_semantics=("parallel", "arbitrary"),
            vmem_limit_bytes=_layer_vmem_limit_bytes(S, D, Dff, tq)),
    )(x, mask,
      p["wq"], p["bq"], p["wk"], p["bk"], p["wv"], p["bv"],
      p["wo"], p["bo"], p["ln1_g"], p["ln1_b"],
      p["w1"], p["b1"], p["w2"], p["b2"], p["ln2_g"], p["ln2_b"])


def transformer_encoder_forward(enc_input, enc_mask, layer_params, *, n_head,
                                eps=_LN_EPS, q_block=None):
    """Forward pass of TrnasformerEncoder (eval mode)."""
    # TODO(synk): nn.Dropout is identity in eval mode; training-mode stochastic
    # dropout (pltpu.prng_seed / prng_random_bits) is not implemented here.
    enc_output = enc_input
    for p in layer_params:
        enc_output = _encoder_layer(enc_output, enc_mask, p,
                                    n_head=n_head, eps=eps, q_block=q_block)
    return enc_output


# ---------------------------------------------------------------------------
# Parameters + pure-JAX reference (for the correctness check)
# ---------------------------------------------------------------------------
def init_layer_params(key, d_model, d_inner):
    ks = jax.random.split(key, 16)
    f32, bf16 = jnp.float32, jnp.bfloat16
    s_in = 1.0 / np.sqrt(d_model)
    s_ff = 1.0 / np.sqrt(d_inner)
    w = lambda k, shape, s: (jax.random.normal(k, shape, f32) * s).astype(bf16)
    b = lambda k, n: jax.random.normal(k, (1, n), f32) * 0.02
    return {
        "wq": w(ks[0], (d_model, d_model), s_in), "bq": b(ks[1], d_model),
        "wk": w(ks[2], (d_model, d_model), s_in), "bk": b(ks[3], d_model),
        "wv": w(ks[4], (d_model, d_model), s_in), "bv": b(ks[5], d_model),
        "wo": w(ks[6], (d_model, d_model), s_in), "bo": b(ks[7], d_model),
        "ln1_g": 1.0 + 0.1 * jax.random.normal(ks[8], (1, d_model), f32),
        "ln1_b": 0.1 * jax.random.normal(ks[9], (1, d_model), f32),
        "w1": w(ks[10], (d_model, d_inner), s_in), "b1": b(ks[11], d_inner),
        "w2": w(ks[12], (d_inner, d_model), s_ff), "b2": b(ks[13], d_model),
        "ln2_g": 1.0 + 0.1 * jax.random.normal(ks[14], (1, d_model), f32),
        "ln2_b": 0.1 * jax.random.normal(ks[15], (1, d_model), f32),
    }


def _ref_encoder(x, mask, layer_params, n_head, eps):
    hi = jax.lax.Precision.HIGHEST
    y = x
    for p in layer_params:
        B, S, D = y.shape
        dk = D // n_head

        def heads(w, bias):
            z = jnp.einsum("bsd,de->bse", y, w.astype(jnp.float32),
                           precision=hi) + bias
            return z.reshape(B, S, n_head, dk).transpose(0, 2, 1, 3)

        q = heads(p["wq"], p["bq"])
        k = heads(p["wk"], p["bk"])
        v = heads(p["wv"], p["bv"])
        s = jnp.einsum("bhqd,bhkd->bhqk", q, k, precision=hi) / np.sqrt(dk)
        s = jnp.where(mask[:, None, :, :] > 0, s, _MASK_FILL)
        a = jax.nn.softmax(s, axis=-1)
        ctx = jnp.einsum("bhqk,bhkd->bhqd", a, v, precision=hi)
        ctx = ctx.transpose(0, 2, 1, 3).reshape(B, S, D)
        y1 = jnp.einsum("bsd,de->bse", ctx, p["wo"].astype(jnp.float32),
                        precision=hi) + p["bo"] + y
        y1 = _layer_norm(y1, p["ln1_g"], p["ln1_b"], eps)
        h = jax.nn.relu(jnp.einsum("bsd,df->bsf", y1,
                                   p["w1"].astype(jnp.float32),
                                   precision=hi) + p["b1"])
        y2 = jnp.einsum("bsf,fd->bsd", h, p["w2"].astype(jnp.float32),
                        precision=hi) + p["b2"] + y1
        y = _layer_norm(y2, p["ln2_g"], p["ln2_b"], eps)
    return y


if __name__ == "__main__":
    def run_check(n_layer, n_head, d_model, d_inner, batch, seq, valid_lens,
                  q_block):
        key = jax.random.PRNGKey(0)
        k_x, k_p = jax.random.split(key)
        enc_input = jax.random.normal(k_x, (batch, seq, d_model), jnp.float32)
        # Key-padding mask (1 = attend, 0 = masked) of shape (B, 1, S).
        mask_np = np.zeros((batch, 1, seq), np.float32)
        for i, vl in enumerate(valid_lens):
            mask_np[i, 0, :vl] = 1.0
        enc_mask = jnp.asarray(mask_np)
        layer_params = tuple(init_layer_params(k, d_model, d_inner)
                             for k in jax.random.split(k_p, n_layer))

        fwd = jax.jit(functools.partial(transformer_encoder_forward,
                                        n_head=n_head, q_block=q_block))
        out = jax.block_until_ready(fwd(enc_input, enc_mask, layer_params))
        ref = _ref_encoder(enc_input, enc_mask, layer_params, n_head, _LN_EPS)
        assert out.shape == (batch, seq, d_model)
        # bf16 MXU operands (f32 accumulation) vs. the f32 reference.
        np.testing.assert_allclose(np.asarray(out), np.asarray(ref),
                                   rtol=4e-2, atol=4e-2)

    # Small, module-consistent shapes.
    run_check(n_layer=2, n_head=4, d_model=32, d_inner=64,
              batch=2, seq=8, valid_lens=[8, 6], q_block=None)
    # Lane-aligned shapes that exercise the query-tile path (2 tiles / batch).
    run_check(n_layer=1, n_head=4, d_model=128, d_inner=256,
              batch=2, seq=256, valid_lens=[256, 192], q_block=128)

    print("KERNEL_OK")
</pallas_src>

<mosaic_0001>
module attributes {stable_mosaic.version = 11 : i64} {
  func.func @_encoder_layer_kernel(%arg0: i32, %arg1: i32, %arg2: memref<1x8x32xf32, #tpu.memory_space<vmem>>, %arg3: memref<1x1x8xf32, #tpu.memory_space<vmem>>, %arg4: memref<32x32xbf16, #tpu.memory_space<vmem>>, %arg5: memref<1x32xf32, #tpu.memory_space<vmem>>, %arg6: memref<32x32xbf16, #tpu.memory_space<vmem>>, %arg7: memref<1x32xf32, #tpu.memory_space<vmem>>, %arg8: memref<32x32xbf16, #tpu.memory_space<vmem>>, %arg9: memref<1x32xf32, #tpu.memory_space<vmem>>, %arg10: memref<32x32xbf16, #tpu.memory_space<vmem>>, %arg11: memref<1x32xf32, #tpu.memory_space<vmem>>, %arg12: memref<1x32xf32, #tpu.memory_space<vmem>>, %arg13: memref<1x32xf32, #tpu.memory_space<vmem>>, %arg14: memref<32x64xbf16, #tpu.memory_space<vmem>>, %arg15: memref<1x64xf32, #tpu.memory_space<vmem>>, %arg16: memref<64x32xbf16, #tpu.memory_space<vmem>>, %arg17: memref<1x32xf32, #tpu.memory_space<vmem>>, %arg18: memref<1x32xf32, #tpu.memory_space<vmem>>, %arg19: memref<1x32xf32, #tpu.memory_space<vmem>>, %arg20: memref<1x8x32xf32, #tpu.memory_space<vmem>>, %arg21: memref<8x32xbf16, #tpu.memory_space<vmem>>, %arg22: memref<8x32xbf16, #tpu.memory_space<vmem>>, %arg23: memref<8x32xf32, #tpu.memory_space<vmem>>) attributes {dimension_semantics = [#tpu.dimension_semantics<parallel>, #tpu.dimension_semantics<arbitrary>], iteration_bounds = array<i64: 2, 1>, scalar_prefetch = 0 : i64, scratch_operands = 3 : i64, tpu.core_type = #tpu.core_type<tc>, window_params = [{transform_indices = @transform_0, window_bounds = array<i64: 1, 8, 32>}, {transform_indices = @transform_1, window_bounds = array<i64: 1, 1, 8>}, {pipeline_mode = #tpu.pipeline_mode<synchronous>, transform_indices = @transform_2, window_bounds = array<i64: 32, 32>}, {pipeline_mode = #tpu.pipeline_mode<synchronous>, transform_indices = @transform_3, window_bounds = array<i64: 1, 32>}, {pipeline_mode = #tpu.pipeline_mode<synchronous>, transform_indices = @transform_4, window_bounds = array<i64: 32, 32>}, {pipeline_mode = #tpu.pipeline_mode<synchronous>, transform_indices = @transform_5, window_bounds = array<i64: 1, 32>}, {pipeline_mode = #tpu.pipeline_mode<synchronous>, transform_indices = @transform_6, window_bounds = array<i64: 32, 32>}, {pipeline_mode = #tpu.pipeline_mode<synchronous>, transform_indices = @transform_7, window_bounds = array<i64: 1, 32>}, {pipeline_mode = #tpu.pipeline_mode<synchronous>, transform_indices = @transform_8, window_bounds = array<i64: 32, 32>}, {pipeline_mode = #tpu.pipeline_mode<synchronous>, transform_indices = @transform_9, window_bounds = array<i64: 1, 32>}, {pipeline_mode = #tpu.pipeline_mode<synchronous>, transform_indices = @transform_10, window_bounds = array<i64: 1, 32>}, {pipeline_mode = #tpu.pipeline_mode<synchronous>, transform_indices = @transform_11, window_bounds = array<i64: 1, 32>}, {pipeline_mode = #tpu.pipeline_mode<synchronous>, transform_indices = @transform_12, window_bounds = array<i64: 32, 64>}, {pipeline_mode = #tpu.pipeline_mode<synchronous>, transform_indices = @transform_13, window_bounds = array<i64: 1, 64>}, {pipeline_mode = #tpu.pipeline_mode<synchronous>, transform_indices = @transform_14, window_bounds = array<i64: 64, 32>}, {pipeline_mode = #tpu.pipeline_mode<synchronous>, transform_indices = @transform_15, window_bounds = array<i64: 1, 32>}, {pipeline_mode = #tpu.pipeline_mode<synchronous>, transform_indices = @transform_16, window_bounds = array<i64: 1, 32>}, {pipeline_mode = #tpu.pipeline_mode<synchronous>, transform_indices = @transform_17, window_bounds = array<i64: 1, 32>}, {transform_indices = @transform_18, window_bounds = array<i64: 1, 8, 32>}]} {
    %c0_i32 = arith.constant 0 : i32
    %0 = arith.cmpi eq, %arg1, %c0_i32 : i32
    %1 = arith.extui %0 : i1 to i32
    %c0_i32_0 = arith.constant 0 : i32
    %2 = arith.cmpi ne, %1, %c0_i32_0 : i32
    scf.if %2 {
      %c0_76 = arith.constant 0 : index
      %c0_77 = arith.constant 0 : index
      %c0_78 = arith.constant 0 : index
      %175 = vector.load %arg2[%c0_76, %c0_77, %c0_78] : memref<1x8x32xf32, #tpu.memory_space<vmem>>, vector<1x8x32xf32>
      %176 = vector.shape_cast %175 : vector<1x8x32xf32> to vector<8x32xf32>
      %177 = arith.truncf %176 : vector<8x32xf32> to vector<8x32xbf16>
      %c0_79 = arith.constant 0 : index
      %c0_80 = arith.constant 0 : index
      %178 = vector.load %arg6[%c0_79, %c0_80] : memref<32x32xbf16, #tpu.memory_space<vmem>>, vector<32x32xbf16>
      %cst_81 = arith.constant dense<0.000000e+00> : vector<8x32xf32>
      %179 = tpu.matmul %177, %178, %cst_81 {dimension_numbers = #tpu.dot_dimension_numbers<[1], [0], [0], [1], [0, 0, 1, 1], [], []>} : vector<8x32xbf16>, vector<32x32xbf16>, vector<8x32xf32> -> vector<8x32xf32>
      %c0_82 = arith.constant 0 : index
      %c0_83 = arith.constant 0 : index
      %180 = vector.load %arg7[%c0_82, %c0_83] : memref<1x32xf32, #tpu.memory_space<vmem>>, vector<1x32xf32>
      %181 = vector.broadcast %180 : vector<1x32xf32> to vector<8x32xf32>
      %182 = arith.addf %179, %181 : vector<8x32xf32>
      %c0_84 = arith.constant 0 : index
      %c0_85 = arith.constant 0 : index
      %183 = vector.load %arg8[%c0_84, %c0_85] : memref<32x32xbf16, #tpu.memory_space<vmem>>, vector<32x32xbf16>
      %cst_86 = arith.constant dense<0.000000e+00> : vector<8x32xf32>
      %184 = tpu.matmul %177, %183, %cst_86 {dimension_numbers = #tpu.dot_dimension_numbers<[1], [0], [0], [1], [0, 0, 1, 1], [], []>} : vector<8x32xbf16>, vector<32x32xbf16>, vector<8x32xf32> -> vector<8x32xf32>
      %c0_87 = arith.constant 0 : index
      %c0_88 = arith.constant 0 : index
      %185 = vector.load %arg9[%c0_87, %c0_88] : memref<1x32xf32, #tpu.memory_space<vmem>>, vector<1x32xf32>
      %186 = vector.broadcast %185 : vector<1x32xf32> to vector<8x32xf32>
      %187 = arith.addf %184, %186 : vector<8x32xf32>
      %188 = arith.truncf %182 : vector<8x32xf32> to vector<8x32xbf16>
      %c0_89 = arith.constant 0 : index
      %c0_90 = arith.constant 0 : index
      %189 = vector.load %arg21[%c0_89, %c0_90] : memref<8x32xbf16, #tpu.memory_space<vmem>>, vector<8x32xbf16>
      tpu.vector_store %arg21[%c0_89, %c0_90], %188 {strides = array<i32>} : memref<8x32xbf16, #tpu.memory_space<vmem>>, vector<8x32xbf16>,
      %190 = arith.truncf %187 : vector<8x32xf32> to vector<8x32xbf16>
      %c0_91 = arith.constant 0 : index
      %c0_92 = arith.constant 0 : index
      %191 = vector.load %arg22[%c0_91, %c0_92] : memref<8x32xbf16, #tpu.memory_space<vmem>>, vector<8x32xbf16>
      tpu.vector_store %arg22[%c0_91, %c0_92], %190 {strides = array<i32>} : memref<8x32xbf16, #tpu.memory_space<vmem>>, vector<8x32xbf16>,
    } else {
    }
    %c8_i32 = arith.constant 8 : i32
    %3 = arith.muli %arg1, %c8_i32 : i32
    %4 = tpu.assume_multiple %3, 8 : i32
    %c0 = arith.constant 0 : index
    %5 = arith.index_cast %4 : i32 to index
    %c0_1 = arith.constant 0 : index
    %6 = vector.load %arg2[%c0, %5, %c0_1] : memref<1x8x32xf32, #tpu.memory_space<vmem>>, vector<1x8x32xf32>
    %7 = vector.shape_cast %6 : vector<1x8x32xf32> to vector<8x32xf32>
    %8 = arith.truncf %7 : vector<8x32xf32> to vector<8x32xbf16>
    %c0_2 = arith.constant 0 : index
    %c0_3 = arith.constant 0 : index
    %9 = vector.load %arg4[%c0_2, %c0_3] : memref<32x32xbf16, #tpu.memory_space<vmem>>, vector<32x32xbf16>
    %cst = arith.constant dense<0.000000e+00> : vector<8x32xf32>
    %10 = tpu.matmul %8, %9, %cst {dimension_numbers = #tpu.dot_dimension_numbers<[1], [0], [0], [1], [0, 0, 1, 1], [], []>} : vector<8x32xbf16>, vector<32x32xbf16>, vector<8x32xf32> -> vector<8x32xf32>
    %c0_4 = arith.constant 0 : index
    %c0_5 = arith.constant 0 : index
    %11 = vector.load %arg5[%c0_4, %c0_5] : memref<1x32xf32, #tpu.memory_space<vmem>>, vector<1x32xf32>
    %12 = vector.broadcast %11 : vector<1x32xf32> to vector<8x32xf32>
    %13 = arith.addf %10, %12 : vector<8x32xf32>
    %cst_6 = arith.constant 0.353553385 : f32
    %14 = vector.broadcast %cst_6 : f32 to vector<8x32xf32>
    %15 = arith.mulf %13, %14 : vector<8x32xf32>
    %16 = arith.truncf %15 : vector<8x32xf32> to vector<8x32xbf16>
    %c0_7 = arith.constant 0 : index
    %c0_8 = arith.constant 0 : index
    %c0_9 = arith.constant 0 : index
    %17 = vector.load %arg3[%c0_7, %c0_8, %c0_9] : memref<1x1x8xf32, #tpu.memory_space<vmem>>, vector<1x1x8xf32>
    %18 = vector.shape_cast %17 : vector<1x1x8xf32> to vector<1x8xf32>
    %cst_10 = arith.constant 1.000000e+00 : f32
    %19 = vector.broadcast %cst_10 : f32 to vector<1x8xf32>
    %20 = arith.subf %18, %19 : vector<1x8xf32>
    %cst_11 = arith.constant 1.000000e+09 : f32
    %21 = vector.broadcast %cst_11 : f32 to vector<1x8xf32>
    %22 = arith.mulf %20, %21 : vector<1x8xf32>
    %c0_12 = arith.constant 0 : index
    %c0_13 = arith.constant 0 : index
    %23 = vector.load %arg21[%c0_12, %c0_13] : memref<8x32xbf16, #tpu.memory_space<vmem>>, vector<8x32xbf16>
    %c0_14 = arith.constant 0 : index
    %c0_15 = arith.constant 0 : index
    %24 = vector.load %arg22[%c0_14, %c0_15] : memref<8x32xbf16, #tpu.memory_space<vmem>>, vector<8x32xbf16>
    %25 = vector.extract_strided_slice %16 {offsets = [0, 0], sizes = [8, 8], strides = [1, 1]} : vector<8x32xbf16> to vector<8x8xbf16>
    %26 = vector.extract_strided_slice %23 {offsets = [0, 0], sizes = [8, 8], strides = [1, 1]} : vector<8x32xbf16> to vector<8x8xbf16>
    "tpu.trace_start"() <{level = 10 : i32, message = "qd,kd->qk"}> : () -> ()
    %cst_16 = arith.constant dense<0.000000e+00> : vector<8x8xf32>
    %27 = tpu.matmul %25, %26, %cst_16 {dimension_numbers = #tpu.dot_dimension_numbers<[1], [1], [0], [0], [0, 0, 1, 0], [], []>} : vector<8x8xbf16>, vector<8x8xbf16>, vector<8x8xf32> -> vector<8x8xf32>
    "tpu.trace_stop"() : () -> ()
    %28 = vector.broadcast %22 : vector<1x8xf32> to vector<8x8xf32>
    %29 = arith.addf %27, %28 : vector<8x8xf32>
    %cst_17 = arith.constant dense<0xFF800000> : vector<8xf32>
    %30 = vector.multi_reduction <maximumf>, %29, %cst_17 [1] : vector<8x8xf32> to vector<8xf32>
    %31 = vector.shape_cast %30 : vector<8xf32> to vector<8x1xf32>
    %32 = vector.broadcast %31 : vector<8x1xf32> to vector<8x8xf32>
    %33 = arith.subf %29, %32 : vector<8x8xf32>
    %34 = math.exp %33 : vector<8x8xf32>
    %cst_18 = arith.constant dense<0.000000e+00> : vector<8xf32>
    %35 = vector.multi_reduction <add>, %34, %cst_18 [1] : vector<8x8xf32> to vector<8xf32>
    %36 = vector.shape_cast %35 : vector<8xf32> to vector<8x1xf32>
    %37 = arith.truncf %34 : vector<8x8xf32> to vector<8x8xbf16>
    %38 = vector.extract_strided_slice %24 {offsets = [0, 0], sizes = [8, 8], strides = [1, 1]} : vector<8x32xbf16> to vector<8x8xbf16>
    %cst_19 = arith.constant dense<0.000000e+00> : vector<8x8xf32>
    %39 = tpu.matmul %37, %38, %cst_19 {dimension_numbers = #tpu.dot_dimension_numbers<[1], [0], [0], [1], [0, 0, 1, 1], [], []>} : vector<8x8xbf16>, vector<8x8xbf16>, vector<8x8xf32> -> vector<8x8xf32>
    %40 = tpu.reciprocal %36 {approx = true} : vector<8x1xf32> -> vector<8x1xf32>
    %41 = vector.broadcast %40 : vector<8x1xf32> to vector<8x8xf32>
    %42 = arith.mulf %39, %41 : vector<8x8xf32>
    %c0_20 = arith.constant 0 : index
    %c0_21 = arith.constant 0 : index
    %43 = vector.load %arg23[%c0_20, %c0_21] : memref<8x32xf32, #tpu.memory_space<vmem>>, vector<8x8xf32>
    tpu.vector_store %arg23[%c0_20, %c0_21], %42 {strides = array<i32>} : memref<8x32xf32, #tpu.memory_space<vmem>>, vector<8x8xf32>,
    %44 = vector.extract_strided_slice %16 {offsets = [0, 8], sizes = [8, 8], strides = [1, 1]} : vector<8x32xbf16> to vector<8x8xbf16>
    %45 = vector.extract_strided_slice %23 {offsets = [0, 8], sizes = [8, 8], strides = [1, 1]} : vector<8x32xbf16> to vector<8x8xbf16>
    "tpu.trace_start"() <{level = 10 : i32, message = "qd,kd->qk"}> : () -> ()
    %cst_22 = arith.constant dense<0.000000e+00> : vector<8x8xf32>
    %46 = tpu.matmul %44, %45, %cst_22 {dimension_numbers = #tpu.dot_dimension_numbers<[1], [1], [0], [0], [0, 0, 1, 0], [], []>} : vector<8x8xbf16>, vector<8x8xbf16>, vector<8x8xf32> -> vector<8x8xf32>
    "tpu.trace_stop"() : () -> ()
    %47 = vector.broadcast %22 : vector<1x8xf32> to vector<8x8xf32>
    %48 = arith.addf %46, %47 : vector<8x8xf32>
    %cst_23 = arith.constant dense<0xFF800000> : vector<8xf32>
    %49 = vector.multi_reduction <maximumf>, %48, %cst_23 [1] : vector<8x8xf32> to vector<8xf32>
    %50 = vector.shape_cast %49 : vector<8xf32> to vector<8x1xf32>
    %51 = vector.broadcast %50 : vector<8x1xf32> to vector<8x8xf32>
    %52 = arith.subf %48, %51 : vector<8x8xf32>
    %53 = math.exp %52 : vector<8x8xf32>
    %cst_24 = arith.constant dense<0.000000e+00> : vector<8xf32>
    %54 = vector.multi_reduction <add>, %53, %cst_24 [1] : vector<8x8xf32> to vector<8xf32>
    %55 = vector.shape_cast %54 : vector<8xf32> to vector<8x1xf32>
    %56 = arith.truncf %53 : vector<8x8xf32> to vector<8x8xbf16>
    %57 = vector.extract_strided_slice %24 {offsets = [0, 8], sizes = [8, 8], strides = [1, 1]} : vector<8x32xbf16> to vector<8x8xbf16>
    %cst_25 = arith.constant dense<0.000000e+00> : vector<8x8xf32>
    %58 = tpu.matmul %56, %57, %cst_25 {dimension_numbers = #tpu.dot_dimension_numbers<[1], [0], [0], [1], [0, 0, 1, 1], [], []>} : vector<8x8xbf16>, vector<8x8xbf16>, vector<8x8xf32> -> vector<8x8xf32>
    %59 = tpu.reciprocal %55 {approx = true} : vector<8x1xf32> -> vector<8x1xf32>
    %60 = vector.broadcast %59 : vector<8x1xf32> to vector<8x8xf32>
    %61 = arith.mulf %58, %60 : vector<8x8xf32>
    %c0_26 = arith.constant 0 : index
    %c8 = arith.constant 8 : index
    %62 = vector.load %arg23[%c0_26, %c8] : memref<8x32xf32, #tpu.memory_space<vmem>>, vector<8x8xf32>
    tpu.vector_store %arg23[%c0_26, %c8], %61 {strides = array<i32>} : memref<8x32xf32, #tpu.memory_space<vmem>>, vector<8x8xf32>,
    %63 = vector.extract_strided_slice %16 {offsets = [0, 16], sizes = [8, 8], strides = [1, 1]} : vector<8x32xbf16> to vector<8x8xbf16>
    %64 = vector.extract_strided_slice %23 {offsets = [0, 16], sizes = [8, 8], strides = [1, 1]} : vector<8x32xbf16> to vector<8x8xbf16>
    "tpu.trace_start"() <{level = 10 : i32, message = "qd,kd->qk"}> : () -> ()
    %cst_27 = arith.constant dense<0.000000e+00> : vector<8x8xf32>
    %65 = tpu.matmul %63, %64, %cst_27 {dimension_numbers = #tpu.dot_dimension_numbers<[1], [1], [0], [0], [0, 0, 1, 0], [], []>} : vector<8x8xbf16>, vector<8x8xbf16>, vector<8x8xf32> -> vector<8x8xf32>
    "tpu.trace_stop"() : () -> ()
    %66 = vector.broadcast %22 : vector<1x8xf32> to vector<8x8xf32>
    %67 = arith.addf %65, %66 : vector<8x8xf32>
    %cst_28 = arith.constant dense<0xFF800000> : vector<8xf32>
    %68 = vector.multi_reduction <maximumf>, %67, %cst_28 [1] : vector<8x8xf32> to vector<8xf32>
    %69 = vector.shape_cast %68 : vector<8xf32> to vector<8x1xf32>
    %70 = vector.broadcast %69 : vector<8x1xf32> to vector<8x8xf32>
    %71 = arith.subf %67, %70 : vector<8x8xf32>
    %72 = math.exp %71 : vector<8x8xf32>
    %cst_29 = arith.constant dense<0.000000e+00> : vector<8xf32>
    %73 = vector.multi_reduction <add>, %72, %cst_29 [1] : vector<8x8xf32> to vector<8xf32>
    %74 = vector.shape_cast %73 : vector<8xf32> to vector<8x1xf32>
    %75 = arith.truncf %72 : vector<8x8xf32> to vector<8x8xbf16>
    %76 = vector.extract_strided_slice %24 {offsets = [0, 16], sizes = [8, 8], strides = [1, 1]} : vector<8x32xbf16> to vector<8x8xbf16>
    %cst_30 = arith.constant dense<0.000000e+00> : vector<8x8xf32>
    %77 = tpu.matmul %75, %76, %cst_30 {dimension_numbers = #tpu.dot_dimension_numbers<[1], [0], [0], [1], [0, 0, 1, 1], [], []>} : vector<8x8xbf16>, vector<8x8xbf16>, vector<8x8xf32> -> vector<8x8xf32>
    %78 = tpu.reciprocal %74 {approx = true} : vector<8x1xf32> -> vector<8x1xf32>
    %79 = vector.broadcast %78 : vector<8x1xf32> to vector<8x8xf32>
    %80 = arith.mulf %77, %79 : vector<8x8xf32>
    %c0_31 = arith.constant 0 : index
    %c16 = arith.constant 16 : index
    %81 = vector.load %arg23[%c0_31, %c16] : memref<8x32xf32, #tpu.memory_space<vmem>>, vector<8x8xf32>
    tpu.vector_store %arg23[%c0_31, %c16], %80 {strides = array<i32>} : memref<8x32xf32, #tpu.memory_space<vmem>>, vector<8x8xf32>,
    %82 = vector.extract_strided_slice %16 {offsets = [0, 24], sizes = [8, 8], strides = [1, 1]} : vector<8x32xbf16> to vector<8x8xbf16>
    %83 = vector.extract_strided_slice %23 {offsets = [0, 24], sizes = [8, 8], strides = [1, 1]} : vector<8x32xbf16> to vector<8x8xbf16>
    "tpu.trace_start"() <{level = 10 : i32, message = "qd,kd->qk"}> : () -> ()
    %cst_32 = arith.constant dense<0.000000e+00> : vector<8x8xf32>
    %84 = tpu.matmul %82, %83, %cst_32 {dimension_numbers = #tpu.dot_dimension_numbers<[1], [1], [0], [0], [0, 0, 1, 0], [], []>} : vector<8x8xbf16>, vector<8x8xbf16>, vector<8x8xf32> -> vector<8x8xf32>
    "tpu.trace_stop"() : () -> ()
    %85 = vector.broadcast %22 : vector<1x8xf32> to vector<8x8xf32>
    %86 = arith.addf %84, %85 : vector<8x8xf32>
    %cst_33 = arith.constant dense<0xFF800000> : vector<8xf32>
    %87 = vector.multi_reduction <maximumf>, %86, %cst_33 [1] : vector<8x8xf32> to vector<8xf32>
    %88 = vector.shape_cast %87 : vector<8xf32> to vector<8x1xf32>
    %89 = vector.broadcast %88 : vector<8x1xf32> to vector<8x8xf32>
    %90 = arith.subf %86, %89 : vector<8x8xf32>
    %91 = math.exp %90 : vector<8x8xf32>
    %cst_34 = arith.constant dense<0.000000e+00> : vector<8xf32>
    %92 = vector.multi_reduction <add>, %91, %cst_34 [1] : vector<8x8xf32> to vector<8xf32>
    %93 = vector.shape_cast %92 : vector<8xf32> to vector<8x1xf32>
    %94 = arith.truncf %91 : vector<8x8xf32> to vector<8x8xbf16>
    %95 = vector.extract_strided_slice %24 {offsets = [0, 24], sizes = [8, 8], strides = [1, 1]} : vector<8x32xbf16> to vector<8x8xbf16>
    %cst_35 = arith.constant dense<0.000000e+00> : vector<8x8xf32>
    %96 = tpu.matmul %94, %95, %cst_35 {dimension_numbers = #tpu.dot_dimension_numbers<[1], [0], [0], [1], [0, 0, 1, 1], [], []>} : vector<8x8xbf16>, vector<8x8xbf16>, vector<8x8xf32> -> vector<8x8xf32>
    %97 = tpu.reciprocal %93 {approx = true} : vector<8x1xf32> -> vector<8x1xf32>
    %98 = vector.broadcast %97 : vector<8x1xf32> to vector<8x8xf32>
    %99 = arith.mulf %96, %98 : vector<8x8xf32>
    %c0_36 = arith.constant 0 : index
    %c24 = arith.constant 24 : index
    %100 = vector.load %arg23[%c0_36, %c24] : memref<8x32xf32, #tpu.memory_space<vmem>>, vector<8x8xf32>
    tpu.vector_store %arg23[%c0_36, %c24], %99 {strides = array<i32>} : memref<8x32xf32, #tpu.memory_space<vmem>>, vector<8x8xf32>,
    %c0_37 = arith.constant 0 : index
    %c0_38 = arith.constant 0 : index
    %101 = vector.load %arg23[%c0_37, %c0_38] : memref<8x32xf32, #tpu.memory_space<vmem>>, vector<8x32xf32>
    %102 = arith.truncf %101 : vector<8x32xf32> to vector<8x32xbf16>
    %c0_39 = arith.constant 0 : index
    %c0_40 = arith.constant 0 : index
    %103 = vector.load %arg10[%c0_39, %c0_40] : memref<32x32xbf16, #tpu.memory_space<vmem>>, vector<32x32xbf16>
    %cst_41 = arith.constant dense<0.000000e+00> : vector<8x32xf32>
    %104 = tpu.matmul %102, %103, %cst_41 {dimension_numbers = #tpu.dot_dimension_numbers<[1], [0], [0], [1], [0, 0, 1, 1], [], []>} : vector<8x32xbf16>, vector<32x32xbf16>, vector<8x32xf32> -> vector<8x32xf32>
    %c0_42 = arith.constant 0 : index
    %c0_43 = arith.constant 0 : index
    %105 = vector.load %arg11[%c0_42, %c0_43] : memref<1x32xf32, #tpu.memory_space<vmem>>, vector<1x32xf32>
    %106 = vector.broadcast %105 : vector<1x32xf32> to vector<8x32xf32>
    %107 = arith.addf %104, %106 : vector<8x32xf32>
    %108 = arith.addf %107, %7 : vector<8x32xf32>
    %c0_44 = arith.constant 0 : index
    %c0_45 = arith.constant 0 : index
    %109 = vector.load %arg12[%c0_44, %c0_45] : memref<1x32xf32, #tpu.memory_space<vmem>>, vector<1x32xf32>
    %c0_46 = arith.constant 0 : index
    %c0_47 = arith.constant 0 : index
    %110 = vector.load %arg13[%c0_46, %c0_47] : memref<1x32xf32, #tpu.memory_space<vmem>>, vector<1x32xf32>
    %cst_48 = arith.constant dense<0.000000e+00> : vector<8xf32>
    %111 = vector.multi_reduction <add>, %108, %cst_48 [1] : vector<8x32xf32> to vector<8xf32>
    %112 = vector.shape_cast %111 : vector<8xf32> to vector<8x1xf32>
    %cst_49 = arith.constant 3.200000e+01 : f32
    %113 = vector.broadcast %cst_49 : f32 to vector<8x1xf32>
    %114 = arith.divf %112, %113 : vector<8x1xf32>
    %115 = vector.broadcast %114 : vector<8x1xf32> to vector<8x32xf32>
    %116 = arith.subf %108, %115 : vector<8x32xf32>
    %117 = arith.mulf %116, %116 : vector<8x32xf32>
    %cst_50 = arith.constant dense<0.000000e+00> : vector<8xf32>
    %118 = vector.multi_reduction <add>, %117, %cst_50 [1] : vector<8x32xf32> to vector<8xf32>
    %119 = vector.shape_cast %118 : vector<8xf32> to vector<8x1xf32>
    %cst_51 = arith.constant 3.200000e+01 : f32
    %120 = vector.broadcast %cst_51 : f32 to vector<8x1xf32>
    %121 = arith.divf %119, %120 : vector<8x1xf32>
    %122 = vector.broadcast %114 : vector<8x1xf32> to vector<8x32xf32>
    %123 = arith.subf %108, %122 : vector<8x32xf32>
    %cst_52 = arith.constant 9.99999997E-7 : f32
    %124 = vector.broadcast %cst_52 : f32 to vector<8x1xf32>
    %125 = arith.addf %121, %124 : vector<8x1xf32>
    %126 = math.rsqrt %125 : vector<8x1xf32>
    %127 = vector.broadcast %126 : vector<8x1xf32> to vector<8x32xf32>
    %128 = arith.mulf %123, %127 : vector<8x32xf32>
    %129 = vector.broadcast %109 : vector<1x32xf32> to vector<8x32xf32>
    %130 = arith.mulf %128, %129 : vector<8x32xf32>
    %131 = vector.broadcast %110 : vector<1x32xf32> to vector<8x32xf32>
    %132 = arith.addf %130, %131 : vector<8x32xf32>
    %133 = arith.truncf %132 : vector<8x32xf32> to vector<8x32xbf16>
    %c0_53 = arith.constant 0 : index
    %c0_54 = arith.constant 0 : index
    %134 = vector.load %arg14[%c0_53, %c0_54] : memref<32x64xbf16, #tpu.memory_space<vmem>>, vector<32x64xbf16>
    %cst_55 = arith.constant dense<0.000000e+00> : vector<8x64xf32>
    %135 = tpu.matmul %133, %134, %cst_55 {dimension_numbers = #tpu.dot_dimension_numbers<[1], [0], [0], [1], [0, 0, 1, 1], [], []>} : vector<8x32xbf16>, vector<32x64xbf16>, vector<8x64xf32> -> vector<8x64xf32>
    %c0_56 = arith.constant 0 : index
    %c0_57 = arith.constant 0 : index
    %136 = vector.load %arg15[%c0_56, %c0_57] : memref<1x64xf32, #tpu.memory_space<vmem>>, vector<1x64xf32>
    %137 = vector.broadcast %136 : vector<1x64xf32> to vector<8x64xf32>
    %138 = arith.addf %135, %137 : vector<8x64xf32>
    %cst_58 = arith.constant 0.000000e+00 : f32
    %139 = vector.broadcast %cst_58 : f32 to vector<8x64xf32>
    %140 = arith.maximumf %138, %139 : vector<8x64xf32>
    %141 = arith.truncf %140 : vector<8x64xf32> to vector<8x64xbf16>
    %c0_59 = arith.constant 0 : index
    %c0_60 = arith.constant 0 : index
    %142 = vector.load %arg16[%c0_59, %c0_60] : memref<64x32xbf16, #tpu.memory_space<vmem>>, vector<64x32xbf16>
    %cst_61 = arith.constant dense<0.000000e+00> : vector<8x32xf32>
    %143 = tpu.matmul %141, %142, %cst_61 {dimension_numbers = #tpu.dot_dimension_numbers<[1], [0], [0], [1], [0, 0, 1, 1], [], []>} : vector<8x64xbf16>, vector<64x32xbf16>, vector<8x32xf32> -> vector<8x32xf32>
    %c0_62 = arith.constant 0 : index
    %c0_63 = arith.constant 0 : index
    %144 = vector.load %arg17[%c0_62, %c0_63] : memref<1x32xf32, #tpu.memory_space<vmem>>, vector<1x32xf32>
    %145 = vector.broadcast %144 : vector<1x32xf32> to vector<8x32xf32>
    %146 = arith.addf %143, %145 : vector<8x32xf32>
    %147 = arith.addf %146, %132 : vector<8x32xf32>
    %c0_64 = arith.constant 0 : index
    %c0_65 = arith.constant 0 : index
    %148 = vector.load %arg18[%c0_64, %c0_65] : memref<1x32xf32, #tpu.memory_space<vmem>>, vector<1x32xf32>
    %c0_66 = arith.constant 0 : index
    %c0_67 = arith.constant 0 : index
    %149 = vector.load %arg19[%c0_66, %c0_67] : memref<1x32xf32, #tpu.memory_space<vmem>>, vector<1x32xf32>
    %cst_68 = arith.constant dense<0.000000e+00> : vector<8xf32>
    %150 = vector.multi_reduction <add>, %147, %cst_68 [1] : vector<8x32xf32> to vector<8xf32>
    %151 = vector.shape_cast %150 : vector<8xf32> to vector<8x1xf32>
    %cst_69 = arith.constant 3.200000e+01 : f32
    %152 = vector.broadcast %cst_69 : f32 to vector<8x1xf32>
    %153 = arith.divf %151, %152 : vector<8x1xf32>
    %154 = vector.broadcast %153 : vector<8x1xf32> to vector<8x32xf32>
    %155 = arith.subf %147, %154 : vector<8x32xf32>
    %156 = arith.mulf %155, %155 : vector<8x32xf32>
    %cst_70 = arith.constant dense<0.000000e+00> : vector<8xf32>
    %157 = vector.multi_reduction <add>, %156, %cst_70 [1] : vector<8x32xf32> to vector<8xf32>
    %158 = vector.shape_cast %157 : vector<8xf32> to vector<8x1xf32>
    %cst_71 = arith.constant 3.200000e+01 : f32
    %159 = vector.broadcast %cst_71 : f32 to vector<8x1xf32>
    %160 = arith.divf %158, %159 : vector<8x1xf32>
    %161 = vector.broadcast %153 : vector<8x1xf32> to vector<8x32xf32>
    %162 = arith.subf %147, %161 : vector<8x32xf32>
    %cst_72 = arith.constant 9.99999997E-7 : f32
    %163 = vector.broadcast %cst_72 : f32 to vector<8x1xf32>
    %164 = arith.addf %160, %163 : vector<8x1xf32>
    %165 = math.rsqrt %164 : vector<8x1xf32>
    %166 = vector.broadcast %165 : vector<8x1xf32> to vector<8x32xf32>
    %167 = arith.mulf %162, %166 : vector<8x32xf32>
    %168 = vector.broadcast %148 : vector<1x32xf32> to vector<8x32xf32>
    %169 = arith.mulf %167, %168 : vector<8x32xf32>
    %170 = vector.broadcast %149 : vector<1x32xf32> to vector<8x32xf32>
    %171 = arith.addf %169, %170 : vector<8x32xf32>
    %c0_73 = arith.constant 0 : index
    %c0_74 = arith.constant 0 : index
    %c0_75 = arith.constant 0 : index
    %172 = vector.load %arg20[%c0_73, %c0_74, %c0_75] : memref<1x8x32xf32, #tpu.memory_space<vmem>>, vector<1x8x32xf32>
    %173 = vector.shape_cast %172 : vector<1x8x32xf32> to vector<8x32xf32>
    %174 = vector.shape_cast %171 : vector<8x32xf32> to vector<1x8x32xf32>
    tpu.vector_store %arg20[%c0_73, %c0_74, %c0_75], %174 {strides = array<i32>} : memref<1x8x32xf32, #tpu.memory_space<vmem>>, vector<1x8x32xf32>,
    return
  }
  func.func @transform_0(%arg0: i32, %arg1: i32) -> (i32, i32, i32) {
    %c0_i32 = arith.constant 0 : i32
    %c0_i32_0 = arith.constant 0 : i32
    %c0_i32_1 = arith.constant 0 : i32
    return %arg0, %c0_i32, %c0_i32_0 : i32, i32, i32
  }
  func.func @transform_1(%arg0: i32, %arg1: i32) -> (i32, i32, i32) {
    %c0_i32 = arith.constant 0 : i32
    %c0_i32_0 = arith.constant 0 : i32
    %c0_i32_1 = arith.constant 0 : i32
    return %arg0, %c0_i32, %c0_i32_0 : i32, i32, i32
  }
  func.func @transform_2(%arg0: i32, %arg1: i32) -> (i32, i32) {
    %c0_i32 = arith.constant 0 : i32
    %c0_i32_0 = arith.constant 0 : i32
    %c0_i32_1 = arith.constant 0 : i32
    return %c0_i32, %c0_i32_0 : i32, i32
  }
  func.func @transform_3(%arg0: i32, %arg1: i32) -> (i32, i32) {
    %c0_i32 = arith.constant 0 : i32
    %c0_i32_0 = arith.constant 0 : i32
    %c0_i32_1 = arith.constant 0 : i32
    return %c0_i32, %c0_i32_0 : i32, i32
  }
  func.func @transform_4(%arg0: i32, %arg1: i32) -> (i32, i32) {
    %c0_i32 = arith.constant 0 : i32
    %c0_i32_0 = arith.constant 0 : i32
    %c0_i32_1 = arith.constant 0 : i32
    return %c0_i32, %c0_i32_0 : i32, i32
  }
  func.func @transform_5(%arg0: i32, %arg1: i32) -> (i32, i32) {
    %c0_i32 = arith.constant 0 : i32
    %c0_i32_0 = arith.constant 0 : i32
    %c0_i32_1 = arith.constant 0 : i32
    return %c0_i32, %c0_i32_0 : i32, i32
  }
  func.func @transform_6(%arg0: i32, %arg1: i32) -> (i32, i32) {
    %c0_i32 = arith.constant 0 : i32
    %c0_i32_0 = arith.constant 0 : i32
    %c0_i32_1 = arith.constant 0 : i32
    return %c0_i32, %c0_i32_0 : i32, i32
  }
  func.func @transform_7(%arg0: i32, %arg1: i32) -> (i32, i32) {
    %c0_i32 = arith.constant 0 : i32
    %c0_i32_0 = arith.constant 0 : i32
    %c0_i32_1 = arith.constant 0 : i32
    return %c0_i32, %c0_i32_0 : i32, i32
  }
  func.func @transform_8(%arg0: i32, %arg1: i32) -> (i32, i32) {
    %c0_i32 = arith.constant 0 : i32
    %c0_i32_0 = arith.constant 0 : i32
    %c0_i32_1 = arith.constant 0 : i32
    return %c0_i32, %c0_i32_0 : i32, i32
  }
  func.func @transform_9(%arg0: i32, %arg1: i32) -> (i32, i32) {
    %c0_i32 = arith.constant 0 : i32
    %c0_i32_0 = arith.constant 0 : i32
    %c0_i32_1 = arith.constant 0 : i32
    return %c0_i32, %c0_i32_0 : i32, i32
  }
  func.func @transform_10(%arg0: i32, %arg1: i32) -> (i32, i32) {
    %c0_i32 = arith.constant 0 : i32
    %c0_i32_0 = arith.constant 0 : i32
    %c0_i32_1 = arith.constant 0 : i32
    return %c0_i32, %c0_i32_0 : i32, i32
  }
  func.func @transform_11(%arg0: i32, %arg1: i32) -> (i32, i32) {
    %c0_i32 = arith.constant 0 : i32
    %c0_i32_0 = arith.constant 0 : i32
    %c0_i32_1 = arith.constant 0 : i32
    return %c0_i32, %c0_i32_0 : i32, i32
  }
  func.func @transform_12(%arg0: i32, %arg1: i32) -> (i32, i32) {
    %c0_i32 = arith.constant 0 : i32
    %c0_i32_0 = arith.constant 0 : i32
    %c0_i32_1 = arith.constant 0 : i32
    return %c0_i32, %c0_i32_0 : i32, i32
  }
  func.func @transform_13(%arg0: i32, %arg1: i32) -> (i32, i32) {
    %c0_i32 = arith.constant 0 : i32
    %c0_i32_0 = arith.constant 0 : i32
    %c0_i32_1 = arith.constant 0 : i32
    return %c0_i32, %c0_i32_0 : i32, i32
  }
  func.func @transform_14(%arg0: i32, %arg1: i32) -> (i32, i32) {
    %c0_i32 = arith.constant 0 : i32
    %c0_i32_0 = arith.constant 0 : i32
    %c0_i32_1 = arith.constant 0 : i32
    return %c0_i32, %c0_i32_0 : i32, i32
  }
  func.func @transform_15(%arg0: i32, %arg1: i32) -> (i32, i32) {
    %c0_i32 = arith.constant 0 : i32
    %c0_i32_0 = arith.constant 0 : i32
    %c0_i32_1 = arith.constant 0 : i32
    return %c0_i32, %c0_i32_0 : i32, i32
  }
  func.func @transform_16(%arg0: i32, %arg1: i32) -> (i32, i32) {
    %c0_i32 = arith.constant 0 : i32
    %c0_i32_0 = arith.constant 0 : i32
    %c0_i32_1 = arith.constant 0 : i32
    return %c0_i32, %c0_i32_0 : i32, i32
  }
  func.func @transform_17(%arg0: i32, %arg1: i32) -> (i32, i32) {
    %c0_i32 = arith.constant 0 : i32
    %c0_i32_0 = arith.constant 0 : i32
    %c0_i32_1 = arith.constant 0 : i32
    return %c0_i32, %c0_i32_0 : i32, i32
  }
  func.func @transform_18(%arg0: i32, %arg1: i32) -> (i32, i32, i32) {
    %c0_i32 = arith.constant 0 : i32
    %c0_i32_0 = arith.constant 0 : i32
    return %arg0, %arg1, %c0_i32 : i32, i32, i32
  }
}

module attributes {stable_mosaic.version = 11 : i64} {
  func.func @_encoder_layer_kernel(%arg0: i32, %arg1: i32, %arg2: memref<1x8x32xf32, #tpu.memory_space<vmem>>, %arg3: memref<1x1x8xf32, #tpu.memory_space<vmem>>, %arg4: memref<32x32xbf16, #tpu.memory_space<vmem>>, %arg5: memref<1x32xf32, #tpu.memory_space<vmem>>, %arg6: memref<32x32xbf16, #tpu.memory_space<vmem>>, %arg7: memref<1x32xf32, #tpu.memory_space<vmem>>, %arg8: memref<32x32xbf16, #tpu.memory_space<vmem>>, %arg9: memref<1x32xf32, #tpu.memory_space<vmem>>, %arg10: memref<32x32xbf16, #tpu.memory_space<vmem>>, %arg11: memref<1x32xf32, #tpu.memory_space<vmem>>, %arg12: memref<1x32xf32, #tpu.memory_space<vmem>>, %arg13: memref<1x32xf32, #tpu.memory_space<vmem>>, %arg14: memref<32x64xbf16, #tpu.memory_space<vmem>>, %arg15: memref<1x64xf32, #tpu.memory_space<vmem>>, %arg16: memref<64x32xbf16, #tpu.memory_space<vmem>>, %arg17: memref<1x32xf32, #tpu.memory_space<vmem>>, %arg18: memref<1x32xf32, #tpu.memory_space<vmem>>, %arg19: memref<1x32xf32, #tpu.memory_space<vmem>>, %arg20: memref<1x8x32xf32, #tpu.memory_space<vmem>>, %arg21: memref<8x32xbf16, #tpu.memory_space<vmem>>, %arg22: memref<8x32xbf16, #tpu.memory_space<vmem>>, %arg23: memref<8x32xf32, #tpu.memory_space<vmem>>) attributes {dimension_semantics = [#tpu.dimension_semantics<parallel>, #tpu.dimension_semantics<arbitrary>], iteration_bounds = array<i64: 2, 1>, scalar_prefetch = 0 : i64, scratch_operands = 3 : i64, tpu.core_type = #tpu.core_type<tc>, window_params = [{transform_indices = @transform_0, window_bounds = array<i64: 1, 8, 32>}, {transform_indices = @transform_1, window_bounds = array<i64: 1, 1, 8>}, {pipeline_mode = #tpu.pipeline_mode<synchronous>, transform_indices = @transform_2, window_bounds = array<i64: 32, 32>}, {pipeline_mode = #tpu.pipeline_mode<synchronous>, transform_indices = @transform_3, window_bounds = array<i64: 1, 32>}, {pipeline_mode = #tpu.pipeline_mode<synchronous>, transform_indices = @transform_4, window_bounds = array<i64: 32, 32>}, {pipeline_mode = #tpu.pipeline_mode<synchronous>, transform_indices = @transform_5, window_bounds = array<i64: 1, 32>}, {pipeline_mode = #tpu.pipeline_mode<synchronous>, transform_indices = @transform_6, window_bounds = array<i64: 32, 32>}, {pipeline_mode = #tpu.pipeline_mode<synchronous>, transform_indices = @transform_7, window_bounds = array<i64: 1, 32>}, {pipeline_mode = #tpu.pipeline_mode<synchronous>, transform_indices = @transform_8, window_bounds = array<i64: 32, 32>}, {pipeline_mode = #tpu.pipeline_mode<synchronous>, transform_indices = @transform_9, window_bounds = array<i64: 1, 32>}, {pipeline_mode = #tpu.pipeline_mode<synchronous>, transform_indices = @transform_10, window_bounds = array<i64: 1, 32>}, {pipeline_mode = #tpu.pipeline_mode<synchronous>, transform_indices = @transform_11, window_bounds = array<i64: 1, 32>}, {pipeline_mode = #tpu.pipeline_mode<synchronous>, transform_indices = @transform_12, window_bounds = array<i64: 32, 64>}, {pipeline_mode = #tpu.pipeline_mode<synchronous>, transform_indices = @transform_13, window_bounds = array<i64: 1, 64>}, {pipeline_mode = #tpu.pipeline_mode<synchronous>, transform_indices = @transform_14, window_bounds = array<i64: 64, 32>}, {pipeline_mode = #tpu.pipeline_mode<synchronous>, transform_indices = @transform_15, window_bounds = array<i64: 1, 32>}, {pipeline_mode = #tpu.pipeline_mode<synchronous>, transform_indices = @transform_16, window_bounds = array<i64: 1, 32>}, {pipeline_mode = #tpu.pipeline_mode<synchronous>, transform_indices = @transform_17, window_bounds = array<i64: 1, 32>}, {transform_indices = @transform_18, window_bounds = array<i64: 1, 8, 32>}]} {
    %c0_i32 = arith.constant 0 : i32
    %0 = arith.cmpi eq, %arg1, %c0_i32 : i32
    %1 = arith.extui %0 : i1 to i32
    %c0_i32_0 = arith.constant 0 : i32
    %2 = arith.cmpi ne, %1, %c0_i32_0 : i32
    scf.if %2 {
      %c0_76 = arith.constant 0 : index
      %c0_77 = arith.constant 0 : index
      %c0_78 = arith.constant 0 : index
      %175 = vector.load %arg2[%c0_76, %c0_77, %c0_78] : memref<1x8x32xf32, #tpu.memory_space<vmem>>, vector<1x8x32xf32>
      %176 = vector.shape_cast %175 : vector<1x8x32xf32> to vector<8x32xf32>
      %177 = arith.truncf %176 : vector<8x32xf32> to vector<8x32xbf16>
      %c0_79 = arith.constant 0 : index
      %c0_80 = arith.constant 0 : index
      %178 = vector.load %arg6[%c0_79, %c0_80] : memref<32x32xbf16, #tpu.memory_space<vmem>>, vector<32x32xbf16>
      %cst_81 = arith.constant dense<0.000000e+00> : vector<8x32xf32>
      %179 = tpu.matmul %177, %178, %cst_81 {dimension_numbers = #tpu.dot_dimension_numbers<[1], [0], [0], [1], [0, 0, 1, 1], [], []>} : vector<8x32xbf16>, vector<32x32xbf16>, vector<8x32xf32> -> vector<8x32xf32>
      %c0_82 = arith.constant 0 : index
      %c0_83 = arith.constant 0 : index
      %180 = vector.load %arg7[%c0_82, %c0_83] : memref<1x32xf32, #tpu.memory_space<vmem>>, vector<1x32xf32>
      %181 = vector.broadcast %180 : vector<1x32xf32> to vector<8x32xf32>
      %182 = arith.addf %179, %181 : vector<8x32xf32>
      %c0_84 = arith.constant 0 : index
      %c0_85 = arith.constant 0 : index
      %183 = vector.load %arg8[%c0_84, %c0_85] : memref<32x32xbf16, #tpu.memory_space<vmem>>, vector<32x32xbf16>
      %cst_86 = arith.constant dense<0.000000e+00> : vector<8x32xf32>
      %184 = tpu.matmul %177, %183, %cst_86 {dimension_numbers = #tpu.dot_dimension_numbers<[1], [0], [0], [1], [0, 0, 1, 1], [], []>} : vector<8x32xbf16>, vector<32x32xbf16>, vector<8x32xf32> -> vector<8x32xf32>
      %c0_87 = arith.constant 0 : index
      %c0_88 = arith.constant 0 : index
      %185 = vector.load %arg9[%c0_87, %c0_88] : memref<1x32xf32, #tpu.memory_space<vmem>>, vector<1x32xf32>
      %186 = vector.broadcast %185 : vector<1x32xf32> to vector<8x32xf32>
      %187 = arith.addf %184, %186 : vector<8x32xf32>
      %188 = arith.truncf %182 : vector<8x32xf32> to vector<8x32xbf16>
      %c0_89 = arith.constant 0 : index
      %c0_90 = arith.constant 0 : index
      %189 = vector.load %arg21[%c0_89, %c0_90] : memref<8x32xbf16, #tpu.memory_space<vmem>>, vector<8x32xbf16>
      tpu.vector_store %arg21[%c0_89, %c0_90], %188 {strides = array<i32>} : memref<8x32xbf16, #tpu.memory_space<vmem>>, vector<8x32xbf16>,
      %190 = arith.truncf %187 : vector<8x32xf32> to vector<8x32xbf16>
      %c0_91 = arith.constant 0 : index
      %c0_92 = arith.constant 0 : index
      %191 = vector.load %arg22[%c0_91, %c0_92] : memref<8x32xbf16, #tpu.memory_space<vmem>>, vector<8x32xbf16>
      tpu.vector_store %arg22[%c0_91, %c0_92], %190 {strides = array<i32>} : memref<8x32xbf16, #tpu.memory_space<vmem>>, vector<8x32xbf16>,
    } else {
    }
    %c8_i32 = arith.constant 8 : i32
    %3 = arith.muli %arg1, %c8_i32 : i32
    %4 = tpu.assume_multiple %3, 8 : i32
    %c0 = arith.constant 0 : index
    %5 = arith.index_cast %4 : i32 to index
    %c0_1 = arith.constant 0 : index
    %6 = vector.load %arg2[%c0, %5, %c0_1] : memref<1x8x32xf32, #tpu.memory_space<vmem>>, vector<1x8x32xf32>
    %7 = vector.shape_cast %6 : vector<1x8x32xf32> to vector<8x32xf32>
    %8 = arith.truncf %7 : vector<8x32xf32> to vector<8x32xbf16>
    %c0_2 = arith.constant 0 : index
    %c0_3 = arith.constant 0 : index
    %9 = vector.load %arg4[%c0_2, %c0_3] : memref<32x32xbf16, #tpu.memory_space<vmem>>, vector<32x32xbf16>
    %cst = arith.constant dense<0.000000e+00> : vector<8x32xf32>
    %10 = tpu.matmul %8, %9, %cst {dimension_numbers = #tpu.dot_dimension_numbers<[1], [0], [0], [1], [0, 0, 1, 1], [], []>} : vector<8x32xbf16>, vector<32x32xbf16>, vector<8x32xf32> -> vector<8x32xf32>
    %c0_4 = arith.constant 0 : index
    %c0_5 = arith.constant 0 : index
    %11 = vector.load %arg5[%c0_4, %c0_5] : memref<1x32xf32, #tpu.memory_space<vmem>>, vector<1x32xf32>
    %12 = vector.broadcast %11 : vector<1x32xf32> to vector<8x32xf32>
    %13 = arith.addf %10, %12 : vector<8x32xf32>
    %cst_6 = arith.constant 0.353553385 : f32
    %14 = vector.broadcast %cst_6 : f32 to vector<8x32xf32>
    %15 = arith.mulf %13, %14 : vector<8x32xf32>
    %16 = arith.truncf %15 : vector<8x32xf32> to vector<8x32xbf16>
    %c0_7 = arith.constant 0 : index
    %c0_8 = arith.constant 0 : index
    %c0_9 = arith.constant 0 : index
    %17 = vector.load %arg3[%c0_7, %c0_8, %c0_9] : memref<1x1x8xf32, #tpu.memory_space<vmem>>, vector<1x1x8xf32>
    %18 = vector.shape_cast %17 : vector<1x1x8xf32> to vector<1x8xf32>
    %cst_10 = arith.constant 1.000000e+00 : f32
    %19 = vector.broadcast %cst_10 : f32 to vector<1x8xf32>
    %20 = arith.subf %18, %19 : vector<1x8xf32>
    %cst_11 = arith.constant 1.000000e+09 : f32
    %21 = vector.broadcast %cst_11 : f32 to vector<1x8xf32>
    %22 = arith.mulf %20, %21 : vector<1x8xf32>
    %c0_12 = arith.constant 0 : index
    %c0_13 = arith.constant 0 : index
    %23 = vector.load %arg21[%c0_12, %c0_13] : memref<8x32xbf16, #tpu.memory_space<vmem>>, vector<8x32xbf16>
    %c0_14 = arith.constant 0 : index
    %c0_15 = arith.constant 0 : index
    %24 = vector.load %arg22[%c0_14, %c0_15] : memref<8x32xbf16, #tpu.memory_space<vmem>>, vector<8x32xbf16>
    %25 = vector.extract_strided_slice %16 {offsets = [0, 0], sizes = [8, 8], strides = [1, 1]} : vector<8x32xbf16> to vector<8x8xbf16>
    %26 = vector.extract_strided_slice %23 {offsets = [0, 0], sizes = [8, 8], strides = [1, 1]} : vector<8x32xbf16> to vector<8x8xbf16>
    "tpu.trace_start"() <{level = 10 : i32, message = "qd,kd->qk"}> : () -> ()
    %cst_16 = arith.constant dense<0.000000e+00> : vector<8x8xf32>
    %27 = tpu.matmul %25, %26, %cst_16 {dimension_numbers = #tpu.dot_dimension_numbers<[1], [1], [0], [0], [0, 0, 1, 0], [], []>} : vector<8x8xbf16>, vector<8x8xbf16>, vector<8x8xf32> -> vector<8x8xf32>
    "tpu.trace_stop"() : () -> ()
    %28 = vector.broadcast %22 : vector<1x8xf32> to vector<8x8xf32>
    %29 = arith.addf %27, %28 : vector<8x8xf32>
    %cst_17 = arith.constant dense<0xFF800000> : vector<8xf32>
    %30 = vector.multi_reduction <maximumf>, %29, %cst_17 [1] : vector<8x8xf32> to vector<8xf32>
    %31 = vector.shape_cast %30 : vector<8xf32> to vector<8x1xf32>
    %32 = vector.broadcast %31 : vector<8x1xf32> to vector<8x8xf32>
    %33 = arith.subf %29, %32 : vector<8x8xf32>
    %34 = math.exp %33 : vector<8x8xf32>
    %cst_18 = arith.constant dense<0.000000e+00> : vector<8xf32>
    %35 = vector.multi_reduction <add>, %34, %cst_18 [1] : vector<8x8xf32> to vector<8xf32>
    %36 = vector.shape_cast %35 : vector<8xf32> to vector<8x1xf32>
    %37 = arith.truncf %34 : vector<8x8xf32> to vector<8x8xbf16>
    %38 = vector.extract_strided_slice %24 {offsets = [0, 0], sizes = [8, 8], strides = [1, 1]} : vector<8x32xbf16> to vector<8x8xbf16>
    %cst_19 = arith.constant dense<0.000000e+00> : vector<8x8xf32>
    %39 = tpu.matmul %37, %38, %cst_19 {dimension_numbers = #tpu.dot_dimension_numbers<[1], [0], [0], [1], [0, 0, 1, 1], [], []>} : vector<8x8xbf16>, vector<8x8xbf16>, vector<8x8xf32> -> vector<8x8xf32>
    %40 = tpu.reciprocal %36 {approx = true} : vector<8x1xf32> -> vector<8x1xf32>
    %41 = vector.broadcast %40 : vector<8x1xf32> to vector<8x8xf32>
    %42 = arith.mulf %39, %41 : vector<8x8xf32>
    %c0_20 = arith.constant 0 : index
    %c0_21 = arith.constant 0 : index
    %43 = vector.load %arg23[%c0_20, %c0_21] : memref<8x32xf32, #tpu.memory_space<vmem>>, vector<8x8xf32>
    tpu.vector_store %arg23[%c0_20, %c0_21], %42 {strides = array<i32>} : memref<8x32xf32, #tpu.memory_space<vmem>>, vector<8x8xf32>,
    %44 = vector.extract_strided_slice %16 {offsets = [0, 8], sizes = [8, 8], strides = [1, 1]} : vector<8x32xbf16> to vector<8x8xbf16>
    %45 = vector.extract_strided_slice %23 {offsets = [0, 8], sizes = [8, 8], strides = [1, 1]} : vector<8x32xbf16> to vector<8x8xbf16>
    "tpu.trace_start"() <{level = 10 : i32, message = "qd,kd->qk"}> : () -> ()
    %cst_22 = arith.constant dense<0.000000e+00> : vector<8x8xf32>
    %46 = tpu.matmul %44, %45, %cst_22 {dimension_numbers = #tpu.dot_dimension_numbers<[1], [1], [0], [0], [0, 0, 1, 0], [], []>} : vector<8x8xbf16>, vector<8x8xbf16>, vector<8x8xf32> -> vector<8x8xf32>
    "tpu.trace_stop"() : () -> ()
    %47 = vector.broadcast %22 : vector<1x8xf32> to vector<8x8xf32>
    %48 = arith.addf %46, %47 : vector<8x8xf32>
    %cst_23 = arith.constant dense<0xFF800000> : vector<8xf32>
    %49 = vector.multi_reduction <maximumf>, %48, %cst_23 [1] : vector<8x8xf32> to vector<8xf32>
    %50 = vector.shape_cast %49 : vector<8xf32> to vector<8x1xf32>
    %51 = vector.broadcast %50 : vector<8x1xf32> to vector<8x8xf32>
    %52 = arith.subf %48, %51 : vector<8x8xf32>
    %53 = math.exp %52 : vector<8x8xf32>
    %cst_24 = arith.constant dense<0.000000e+00> : vector<8xf32>
    %54 = vector.multi_reduction <add>, %53, %cst_24 [1] : vector<8x8xf32> to vector<8xf32>
    %55 = vector.shape_cast %54 : vector<8xf32> to vector<8x1xf32>
    %56 = arith.truncf %53 : vector<8x8xf32> to vector<8x8xbf16>
    %57 = vector.extract_strided_slice %24 {offsets = [0, 8], sizes = [8, 8], strides = [1, 1]} : vector<8x32xbf16> to vector<8x8xbf16>
    %cst_25 = arith.constant dense<0.000000e+00> : vector<8x8xf32>
    %58 = tpu.matmul %56, %57, %cst_25 {dimension_numbers = #tpu.dot_dimension_numbers<[1], [0], [0], [1], [0, 0, 1, 1], [], []>} : vector<8x8xbf16>, vector<8x8xbf16>, vector<8x8xf32> -> vector<8x8xf32>
    %59 = tpu.reciprocal %55 {approx = true} : vector<8x1xf32> -> vector<8x1xf32>
    %60 = vector.broadcast %59 : vector<8x1xf32> to vector<8x8xf32>
    %61 = arith.mulf %58, %60 : vector<8x8xf32>
    %c0_26 = arith.constant 0 : index
    %c8 = arith.constant 8 : index
    %62 = vector.load %arg23[%c0_26, %c8] : memref<8x32xf32, #tpu.memory_space<vmem>>, vector<8x8xf32>
    tpu.vector_store %arg23[%c0_26, %c8], %61 {strides = array<i32>} : memref<8x32xf32, #tpu.memory_space<vmem>>, vector<8x8xf32>,
    %63 = vector.extract_strided_slice %16 {offsets = [0, 16], sizes = [8, 8], strides = [1, 1]} : vector<8x32xbf16> to vector<8x8xbf16>
    %64 = vector.extract_strided_slice %23 {offsets = [0, 16], sizes = [8, 8], strides = [1, 1]} : vector<8x32xbf16> to vector<8x8xbf16>
    "tpu.trace_start"() <{level = 10 : i32, message = "qd,kd->qk"}> : () -> ()
    %cst_27 = arith.constant dense<0.000000e+00> : vector<8x8xf32>
    %65 = tpu.matmul %63, %64, %cst_27 {dimension_numbers = #tpu.dot_dimension_numbers<[1], [1], [0], [0], [0, 0, 1, 0], [], []>} : vector<8x8xbf16>, vector<8x8xbf16>, vector<8x8xf32> -> vector<8x8xf32>
    "tpu.trace_stop"() : () -> ()
    %66 = vector.broadcast %22 : vector<1x8xf32> to vector<8x8xf32>
    %67 = arith.addf %65, %66 : vector<8x8xf32>
    %cst_28 = arith.constant dense<0xFF800000> : vector<8xf32>
    %68 = vector.multi_reduction <maximumf>, %67, %cst_28 [1] : vector<8x8xf32> to vector<8xf32>
    %69 = vector.shape_cast %68 : vector<8xf32> to vector<8x1xf32>
    %70 = vector.broadcast %69 : vector<8x1xf32> to vector<8x8xf32>
    %71 = arith.subf %67, %70 : vector<8x8xf32>
    %72 = math.exp %71 : vector<8x8xf32>
    %cst_29 = arith.constant dense<0.000000e+00> : vector<8xf32>
    %73 = vector.multi_reduction <add>, %72, %cst_29 [1] : vector<8x8xf32> to vector<8xf32>
    %74 = vector.shape_cast %73 : vector<8xf32> to vector<8x1xf32>
    %75 = arith.truncf %72 : vector<8x8xf32> to vector<8x8xbf16>
    %76 = vector.extract_strided_slice %24 {offsets = [0, 16], sizes = [8, 8], strides = [1, 1]} : vector<8x32xbf16> to vector<8x8xbf16>
    %cst_30 = arith.constant dense<0.000000e+00> : vector<8x8xf32>
    %77 = tpu.matmul %75, %76, %cst_30 {dimension_numbers = #tpu.dot_dimension_numbers<[1], [0], [0], [1], [0, 0, 1, 1], [], []>} : vector<8x8xbf16>, vector<8x8xbf16>, vector<8x8xf32> -> vector<8x8xf32>
    %78 = tpu.reciprocal %74 {approx = true} : vector<8x1xf32> -> vector<8x1xf32>
    %79 = vector.broadcast %78 : vector<8x1xf32> to vector<8x8xf32>
    %80 = arith.mulf %77, %79 : vector<8x8xf32>
    %c0_31 = arith.constant 0 : index
    %c16 = arith.constant 16 : index
    %81 = vector.load %arg23[%c0_31, %c16] : memref<8x32xf32, #tpu.memory_space<vmem>>, vector<8x8xf32>
    tpu.vector_store %arg23[%c0_31, %c16], %80 {strides = array<i32>} : memref<8x32xf32, #tpu.memory_space<vmem>>, vector<8x8xf32>,
    %82 = vector.extract_strided_slice %16 {offsets = [0, 24], sizes = [8, 8], strides = [1, 1]} : vector<8x32xbf16> to vector<8x8xbf16>
    %83 = vector.extract_strided_slice %23 {offsets = [0, 24], sizes = [8, 8], strides = [1, 1]} : vector<8x32xbf16> to vector<8x8xbf16>
    "tpu.trace_start"() <{level = 10 : i32, message = "qd,kd->qk"}> : () -> ()
    %cst_32 = arith.constant dense<0.000000e+00> : vector<8x8xf32>
    %84 = tpu.matmul %82, %83, %cst_32 {dimension_numbers = #tpu.dot_dimension_numbers<[1], [1], [0], [0], [0, 0, 1, 0], [], []>} : vector<8x8xbf16>, vector<8x8xbf16>, vector<8x8xf32> -> vector<8x8xf32>
    "tpu.trace_stop"() : () -> ()
    %85 = vector.broadcast %22 : vector<1x8xf32> to vector<8x8xf32>
    %86 = arith.addf %84, %85 : vector<8x8xf32>
    %cst_33 = arith.constant dense<0xFF800000> : vector<8xf32>
    %87 = vector.multi_reduction <maximumf>, %86, %cst_33 [1] : vector<8x8xf32> to vector<8xf32>
    %88 = vector.shape_cast %87 : vector<8xf32> to vector<8x1xf32>
    %89 = vector.broadcast %88 : vector<8x1xf32> to vector<8x8xf32>
    %90 = arith.subf %86, %89 : vector<8x8xf32>
    %91 = math.exp %90 : vector<8x8xf32>
    %cst_34 = arith.constant dense<0.000000e+00> : vector<8xf32>
    %92 = vector.multi_reduction <add>, %91, %cst_34 [1] : vector<8x8xf32> to vector<8xf32>
    %93 = vector.shape_cast %92 : vector<8xf32> to vector<8x1xf32>
    %94 = arith.truncf %91 : vector<8x8xf32> to vector<8x8xbf16>
    %95 = vector.extract_strided_slice %24 {offsets = [0, 24], sizes = [8, 8], strides = [1, 1]} : vector<8x32xbf16> to vector<8x8xbf16>
    %cst_35 = arith.constant dense<0.000000e+00> : vector<8x8xf32>
    %96 = tpu.matmul %94, %95, %cst_35 {dimension_numbers = #tpu.dot_dimension_numbers<[1], [0], [0], [1], [0, 0, 1, 1], [], []>} : vector<8x8xbf16>, vector<8x8xbf16>, vector<8x8xf32> -> vector<8x8xf32>
    %97 = tpu.reciprocal %93 {approx = true} : vector<8x1xf32> -> vector<8x1xf32>
    %98 = vector.broadcast %97 : vector<8x1xf32> to vector<8x8xf32>
    %99 = arith.mulf %96, %98 : vector<8x8xf32>
    %c0_36 = arith.constant 0 : index
    %c24 = arith.constant 24 : index
    %100 = vector.load %arg23[%c0_36, %c24] : memref<8x32xf32, #tpu.memory_space<vmem>>, vector<8x8xf32>
    tpu.vector_store %arg23[%c0_36, %c24], %99 {strides = array<i32>} : memref<8x32xf32, #tpu.memory_space<vmem>>, vector<8x8xf32>,
    %c0_37 = arith.constant 0 : index
    %c0_38 = arith.constant 0 : index
    %101 = vector.load %arg23[%c0_37, %c0_38] : memref<8x32xf32, #tpu.memory_space<vmem>>, vector<8x32xf32>
    %102 = arith.truncf %101 : vector<8x32xf32> to vector<8x32xbf16>
    %c0_39 = arith.constant 0 : index
    %c0_40 = arith.constant 0 : index
    %103 = vector.load %arg10[%c0_39, %c0_40] : memref<32x32xbf16, #tpu.memory_space<vmem>>, vector<32x32xbf16>
    %cst_41 = arith.constant dense<0.000000e+00> : vector<8x32xf32>
    %104 = tpu.matmul %102, %103, %cst_41 {dimension_numbers = #tpu.dot_dimension_numbers<[1], [0], [0], [1], [0, 0, 1, 1], [], []>} : vector<8x32xbf16>, vector<32x32xbf16>, vector<8x32xf32> -> vector<8x32xf32>
    %c0_42 = arith.constant 0 : index
    %c0_43 = arith.constant 0 : index
    %105 = vector.load %arg11[%c0_42, %c0_43] : memref<1x32xf32, #tpu.memory_space<vmem>>, vector<1x32xf32>
    %106 = vector.broadcast %105 : vector<1x32xf32> to vector<8x32xf32>
    %107 = arith.addf %104, %106 : vector<8x32xf32>
    %108 = arith.addf %107, %7 : vector<8x32xf32>
    %c0_44 = arith.constant 0 : index
    %c0_45 = arith.constant 0 : index
    %109 = vector.load %arg12[%c0_44, %c0_45] : memref<1x32xf32, #tpu.memory_space<vmem>>, vector<1x32xf32>
    %c0_46 = arith.constant 0 : index
    %c0_47 = arith.constant 0 : index
    %110 = vector.load %arg13[%c0_46, %c0_47] : memref<1x32xf32, #tpu.memory_space<vmem>>, vector<1x32xf32>
    %cst_48 = arith.constant dense<0.000000e+00> : vector<8xf32>
    %111 = vector.multi_reduction <add>, %108, %cst_48 [1] : vector<8x32xf32> to vector<8xf32>
    %112 = vector.shape_cast %111 : vector<8xf32> to vector<8x1xf32>
    %cst_49 = arith.constant 3.200000e+01 : f32
    %113 = vector.broadcast %cst_49 : f32 to vector<8x1xf32>
    %114 = arith.divf %112, %113 : vector<8x1xf32>
    %115 = vector.broadcast %114 : vector<8x1xf32> to vector<8x32xf32>
    %116 = arith.subf %108, %115 : vector<8x32xf32>
    %117 = arith.mulf %116, %116 : vector<8x32xf32>
    %cst_50 = arith.constant dense<0.000000e+00> : vector<8xf32>
    %118 = vector.multi_reduction <add>, %117, %cst_50 [1] : vector<8x32xf32> to vector<8xf32>
    %119 = vector.shape_cast %118 : vector<8xf32> to vector<8x1xf32>
    %cst_51 = arith.constant 3.200000e+01 : f32
    %120 = vector.broadcast %cst_51 : f32 to vector<8x1xf32>
    %121 = arith.divf %119, %120 : vector<8x1xf32>
    %122 = vector.broadcast %114 : vector<8x1xf32> to vector<8x32xf32>
    %123 = arith.subf %108, %122 : vector<8x32xf32>
    %cst_52 = arith.constant 9.99999997E-7 : f32
    %124 = vector.broadcast %cst_52 : f32 to vector<8x1xf32>
    %125 = arith.addf %121, %124 : vector<8x1xf32>
    %126 = math.rsqrt %125 : vector<8x1xf32>
    %127 = vector.broadcast %126 : vector<8x1xf32> to vector<8x32xf32>
    %128 = arith.mulf %123, %127 : vector<8x32xf32>
    %129 = vector.broadcast %109 : vector<1x32xf32> to vector<8x32xf32>
    %130 = arith.mulf %128, %129 : vector<8x32xf32>
    %131 = vector.broadcast %110 : vector<1x32xf32> to vector<8x32xf32>
    %132 = arith.addf %130, %131 : vector<8x32xf32>
    %133 = arith.truncf %132 : vector<8x32xf32> to vector<8x32xbf16>
    %c0_53 = arith.constant 0 : index
    %c0_54 = arith.constant 0 : index
    %134 = vector.load %arg14[%c0_53, %c0_54] : memref<32x64xbf16, #tpu.memory_space<vmem>>, vector<32x64xbf16>
    %cst_55 = arith.constant dense<0.000000e+00> : vector<8x64xf32>
    %135 = tpu.matmul %133, %134, %cst_55 {dimension_numbers = #tpu.dot_dimension_numbers<[1], [0], [0], [1], [0, 0, 1, 1], [], []>} : vector<8x32xbf16>, vector<32x64xbf16>, vector<8x64xf32> -> vector<8x64xf32>
    %c0_56 = arith.constant 0 : index
    %c0_57 = arith.constant 0 : index
    %136 = vector.load %arg15[%c0_56, %c0_57] : memref<1x64xf32, #tpu.memory_space<vmem>>, vector<1x64xf32>
    %137 = vector.broadcast %136 : vector<1x64xf32> to vector<8x64xf32>
    %138 = arith.addf %135, %137 : vector<8x64xf32>
    %cst_58 = arith.constant 0.000000e+00 : f32
    %139 = vector.broadcast %cst_58 : f32 to vector<8x64xf32>
    %140 = arith.maximumf %138, %139 : vector<8x64xf32>
    %141 = arith.truncf %140 : vector<8x64xf32> to vector<8x64xbf16>
    %c0_59 = arith.constant 0 : index
    %c0_60 = arith.constant 0 : index
    %142 = vector.load %arg16[%c0_59, %c0_60] : memref<64x32xbf16, #tpu.memory_space<vmem>>, vector<64x32xbf16>
    %cst_61 = arith.constant dense<0.000000e+00> : vector<8x32xf32>
    %143 = tpu.matmul %141, %142, %cst_61 {dimension_numbers = #tpu.dot_dimension_numbers<[1], [0], [0], [1], [0, 0, 1, 1], [], []>} : vector<8x64xbf16>, vector<64x32xbf16>, vector<8x32xf32> -> vector<8x32xf32>
    %c0_62 = arith.constant 0 : index
    %c0_63 = arith.constant 0 : index
    %144 = vector.load %arg17[%c0_62, %c0_63] : memref<1x32xf32, #tpu.memory_space<vmem>>, vector<1x32xf32>
    %145 = vector.broadcast %144 : vector<1x32xf32> to vector<8x32xf32>
    %146 = arith.addf %143, %145 : vector<8x32xf32>
    %147 = arith.addf %146, %132 : vector<8x32xf32>
    %c0_64 = arith.constant 0 : index
    %c0_65 = arith.constant 0 : index
    %148 = vector.load %arg18[%c0_64, %c0_65] : memref<1x32xf32, #tpu.memory_space<vmem>>, vector<1x32xf32>
    %c0_66 = arith.constant 0 : index
    %c0_67 = arith.constant 0 : index
    %149 = vector.load %arg19[%c0_66, %c0_67] : memref<1x32xf32, #tpu.memory_space<vmem>>, vector<1x32xf32>
    %cst_68 = arith.constant dense<0.000000e+00> : vector<8xf32>
    %150 = vector.multi_reduction <add>, %147, %cst_68 [1] : vector<8x32xf32> to vector<8xf32>
    %151 = vector.shape_cast %150 : vector<8xf32> to vector<8x1xf32>
    %cst_69 = arith.constant 3.200000e+01 : f32
    %152 = vector.broadcast %cst_69 : f32 to vector<8x1xf32>
    %153 = arith.divf %151, %152 : vector<8x1xf32>
    %154 = vector.broadcast %153 : vector<8x1xf32> to vector<8x32xf32>
    %155 = arith.subf %147, %154 : vector<8x32xf32>
    %156 = arith.mulf %155, %155 : vector<8x32xf32>
    %cst_70 = arith.constant dense<0.000000e+00> : vector<8xf32>
    %157 = vector.multi_reduction <add>, %156, %cst_70 [1] : vector<8x32xf32> to vector<8xf32>
    %158 = vector.shape_cast %157 : vector<8xf32> to vector<8x1xf32>
    %cst_71 = arith.constant 3.200000e+01 : f32
    %159 = vector.broadcast %cst_71 : f32 to vector<8x1xf32>
    %160 = arith.divf %158, %159 : vector<8x1xf32>
    %161 = vector.broadcast %153 : vector<8x1xf32> to vector<8x32xf32>
    %162 = arith.subf %147, %161 : vector<8x32xf32>
    %cst_72 = arith.constant 9.99999997E-7 : f32
    %163 = vector.broadcast %cst_72 : f32 to vector<8x1xf32>
    %164 = arith.addf %160, %163 : vector<8x1xf32>
    %165 = math.rsqrt %164 : vector<8x1xf32>
    %166 = vector.broadcast %165 : vector<8x1xf32> to vector<8x32xf32>
    %167 = arith.mulf %162, %166 : vector<8x32xf32>
    %168 = vector.broadcast %148 : vector<1x32xf32> to vector<8x32xf32>
    %169 = arith.mulf %167, %168 : vector<8x32xf32>
    %170 = vector.broadcast %149 : vector<1x32xf32> to vector<8x32xf32>
    %171 = arith.addf %169, %170 : vector<8x32xf32>
    %c0_73 = arith.constant 0 : index
    %c0_74 = arith.constant 0 : index
    %c0_75 = arith.constant 0 : index
    %172 = vector.load %arg20[%c0_73, %c0_74, %c0_75] : memref<1x8x32xf32, #tpu.memory_space<vmem>>, vector<1x8x32xf32>
    %173 = vector.shape_cast %172 : vector<1x8x32xf32> to vector<8x32xf32>
    %174 = vector.shape_cast %171 : vector<8x32xf32> to vector<1x8x32xf32>
    tpu.vector_store %arg20[%c0_73, %c0_74, %c0_75], %174 {strides = array<i32>} : memref<1x8x32xf32, #tpu.memory_space<vmem>>, vector<1x8x32xf32>,
    return
  }
  func.func @transform_0(%arg0: i32, %arg1: i32) -> (i32, i32, i32) {
    %c0_i32 = arith.constant 0 : i32
    %c0_i32_0 = arith.constant 0 : i32
    %c0_i32_1 = arith.constant 0 : i32
    return %arg0, %c0_i32, %c0_i32_0 : i32, i32, i32
  }
  func.func @transform_1(%arg0: i32, %arg1: i32) -> (i32, i32, i32) {
    %c0_i32 = arith.constant 0 : i32
    %c0_i32_0 = arith.constant 0 : i32
    %c0_i32_1 = arith.constant 0 : i32
    return %arg0, %c0_i32, %c0_i32_0 : i32, i32, i32
  }
  func.func @transform_2(%arg0: i32, %arg1: i32) -> (i32, i32) {
    %c0_i32 = arith.constant 0 : i32
    %c0_i32_0 = arith.constant 0 : i32
    %c0_i32_1 = arith.constant 0 : i32
    return %c0_i32, %c0_i32_0 : i32, i32
  }
  func.func @transform_3(%arg0: i32, %arg1: i32) -> (i32, i32) {
    %c0_i32 = arith.constant 0 : i32
    %c0_i32_0 = arith.constant 0 : i32
    %c0_i32_1 = arith.constant 0 : i32
    return %c0_i32, %c0_i32_0 : i32, i32
  }
  func.func @transform_4(%arg0: i32, %arg1: i32) -> (i32, i32) {
    %c0_i32 = arith.constant 0 : i32
    %c0_i32_0 = arith.constant 0 : i32
    %c0_i32_1 = arith.constant 0 : i32
    return %c0_i32, %c0_i32_0 : i32, i32
  }
  func.func @transform_5(%arg0: i32, %arg1: i32) -> (i32, i32) {
    %c0_i32 = arith.constant 0 : i32
    %c0_i32_0 = arith.constant 0 : i32
    %c0_i32_1 = arith.constant 0 : i32
    return %c0_i32, %c0_i32_0 : i32, i32
  }
  func.func @transform_6(%arg0: i32, %arg1: i32) -> (i32, i32) {
    %c0_i32 = arith.constant 0 : i32
    %c0_i32_0 = arith.constant 0 : i32
    %c0_i32_1 = arith.constant 0 : i32
    return %c0_i32, %c0_i32_0 : i32, i32
  }
  func.func @transform_7(%arg0: i32, %arg1: i32) -> (i32, i32) {
    %c0_i32 = arith.constant 0 : i32
    %c0_i32_0 = arith.constant 0 : i32
    %c0_i32_1 = arith.constant 0 : i32
    return %c0_i32, %c0_i32_0 : i32, i32
  }
  func.func @transform_8(%arg0: i32, %arg1: i32) -> (i32, i32) {
    %c0_i32 = arith.constant 0 : i32
    %c0_i32_0 = arith.constant 0 : i32
    %c0_i32_1 = arith.constant 0 : i32
    return %c0_i32, %c0_i32_0 : i32, i32
  }
  func.func @transform_9(%arg0: i32, %arg1: i32) -> (i32, i32) {
    %c0_i32 = arith.constant 0 : i32
    %c0_i32_0 = arith.constant 0 : i32
    %c0_i32_1 = arith.constant 0 : i32
    return %c0_i32, %c0_i32_0 : i32, i32
  }
  func.func @transform_10(%arg0: i32, %arg1: i32) -> (i32, i32) {
    %c0_i32 = arith.constant 0 : i32
    %c0_i32_0 = arith.constant 0 : i32
    %c0_i32_1 = arith.constant 0 : i32
    return %c0_i32, %c0_i32_0 : i32, i32
  }
  func.func @transform_11(%arg0: i32, %arg1: i32) -> (i32, i32) {
    %c0_i32 = arith.constant 0 : i32
    %c0_i32_0 = arith.constant 0 : i32
    %c0_i32_1 = arith.constant 0 : i32
    return %c0_i32, %c0_i32_0 : i32, i32
  }
  func.func @transform_12(%arg0: i32, %arg1: i32) -> (i32, i32) {
    %c0_i32 = arith.constant 0 : i32
    %c0_i32_0 = arith.constant 0 : i32
    %c0_i32_1 = arith.constant 0 : i32
    return %c0_i32, %c0_i32_0 : i32, i32
  }
  func.func @transform_13(%arg0: i32, %arg1: i32) -> (i32, i32) {
    %c0_i32 = arith.constant 0 : i32
    %c0_i32_0 = arith.constant 0 : i32
    %c0_i32_1 = arith.constant 0 : i32
    return %c0_i32, %c0_i32_0 : i32, i32
  }
  func.func @transform_14(%arg0: i32, %arg1: i32) -> (i32, i32) {
    %c0_i32 = arith.constant 0 : i32
    %c0_i32_0 = arith.constant 0 : i32
    %c0_i32_1 = arith.constant 0 : i32
    return %c0_i32, %c0_i32_0 : i32, i32
  }
  func.func @transform_15(%arg0: i32, %arg1: i32) -> (i32, i32) {
    %c0_i32 = arith.constant 0 : i32
    %c0_i32_0 = arith.constant 0 : i32
    %c0_i32_1 = arith.constant 0 : i32
    return %c0_i32, %c0_i32_0 : i32, i32
  }
  func.func @transform_16(%arg0: i32, %arg1: i32) -> (i32, i32) {
    %c0_i32 = arith.constant 0 : i32
    %c0_i32_0 = arith.constant 0 : i32
    %c0_i32_1 = arith.constant 0 : i32
    return %c0_i32, %c0_i32_0 : i32, i32
  }
  func.func @transform_17(%arg0: i32, %arg1: i32) -> (i32, i32) {
    %c0_i32 = arith.constant 0 : i32
    %c0_i32_0 = arith.constant 0 : i32
    %c0_i32_1 = arith.constant 0 : i32
    return %c0_i32, %c0_i32_0 : i32, i32
  }
  func.func @transform_18(%arg0: i32, %arg1: i32) -> (i32, i32, i32) {
    %c0_i32 = arith.constant 0 : i32
    %c0_i32_0 = arith.constant 0 : i32
    return %arg0, %arg1, %c0_i32 : i32, i32, i32
  }
}

</mosaic_0001>

<bundles_post_ra>
// kernel: transformer_encoder_forward.2
= control target key start
LH: loop header
LB: loop body
LE: loop exit
PB: predicated region body
PF: predicated region fallthrough
CT: control target
= control target key end

     0   :  { %s3169_s0 = inlined_call_operand.vmem [shape: f32[2,8,32], index: 0, kind: input, shape index: {}]   ;;  %s3170_s1 = inlined_call_operand.vmem [shape: f32[2,1,8], index: 1, kind: input, shape index: {}]   ;;  %s3171_s2 = inlined_call_operand.vmem [shape: bf16[32,32], index: 2, kind: input, shape index: {}]   ;;  %s3172_s3 = inlined_call_operand.vmem [shape: f32[1,32], index: 3, kind: input, shape index: {}]   ;;  %s3173_s4 = inlined_call_operand.vmem [shape: bf16[32,32], index: 4, kind: input, shape index: {}]   ;;  %s3174_s5 = inlined_call_operand.hbm [shape: f32[1,32], index: 5, kind: input, shape index: {}]   ;;  %s3175_s6 = inlined_call_operand.vmem [shape: bf16[32,32], index: 6, kind: input, shape index: {}]   ;;  %s3176_s7 = inlined_call_operand.hbm [shape: f32[1,32], index: 7, kind: input, shape index: {}]   ;;  %s3177_s8 = inlined_call_operand.vmem [shape: bf16[32,32], index: 8, kind: input, shape index: {}]   ;;  %s3178_s9 = inlined_call_operand.hbm [shape: f32[1,32], index: 9, kind: input, shape index: {}]   ;;  %s3179_s10 = inlined_call_operand.hbm [shape: f32[1,32], index: 10, kind: input, shape index: {}]   ;;  %s3180_s11 = inlined_call_operand.hbm [shape: f32[1,32], index: 11, kind: input, shape index: {}]   ;;  %s3181_s12 = inlined_call_operand.hbm [shape: bf16[32,64], index: 12, kind: input, shape index: {}]   ;;  %s3182_s13 = inlined_call_operand.hbm [shape: f32[1,64], index: 13, kind: input, shape index: {}]   ;;  %s3183_s14 = inlined_call_operand.vmem [shape: bf16[64,32], index: 14, kind: input, shape index: {}]   ;;  %s3184_s15 = inlined_call_operand.hbm [shape: f32[1,32], index: 15, kind: input, shape index: {}]   ;;  %s3185_s16 = inlined_call_operand.hbm [shape: f32[1,32], index: 16, kind: input, shape index: {}]   ;;  %s3186_s17 = inlined_call_operand.hbm [shape: f32[1,32], index: 17, kind: input, shape index: {}]   ;;  %s3187_s18 = inlined_call_operand.vmem [shape: f32[2,8,32], index: 18, kind: output, shape index: {}]  }
   0x1   :  { %3195 = sst [smem:[#allocation28_spill]] %s3169_s0 }
   0x2   :  { %3196 = sst [smem:[#allocation29_spill]] %s3170_s1 }
   0x3   :  { %3197 = sst [smem:[#allocation30_spill]] %s3171_s2 }
   0x4   :  { %3198 = sst [smem:[#allocation31_spill]] %s3172_s3 }
   0x5   :  { %3199 = sst [smem:[#allocation32_spill]] %s3176_s7 }
   0x6   :  { %3200 = sst [smem:[#allocation33_spill]] %s3177_s8 }
   0x7   :  { %3201 = sst [smem:[#allocation34_spill]] %s3183_s14 }
   0x8   :  { %3202 = sst [smem:[#allocation35_spill]] %s3187_s18 }
   0x9   :  { %23 = vsyncpa [#allocation6], 0 }
   0xa   :  { %24 = vsyncpa [#allocation8], 0 }
   0xb   :  { %25 = vsyncpa [#allocation11], 0 }
   0xc   :  { %26 = vsyncpa [#allocation14], 0 }
   0xd   :  { %27 = vsyncpa [#allocation17], 0 }
   0xe   :  { %28 = vsyncpa [#allocation20], 0  ;;  %s2704_s27 = smov 0   ;;  %s2706_s28 = smov 0  }
   0xf   :  { %s2708_s29 = smov 0  }
  0x10 LB: > { %3203 = sst [smem:[#allocation27_spill]] %s2587_s29  ;;  %s2589_s30 = smov [#allocation7]   ;;  %s2587_s29 = sphi %s2708_s29, %s34_s29   ;;  %s2583_s28 = sphi %s2706_s28, %s3223_s28   ;;  %s2579_s27 = sphi %s2704_s27, %s3222_s27  }
  0x11   : > { %s503_s0 = sshll.u32 %s2589_s30, 4  ;;  %s1884_s19 = sadd.s32 4294967295, %s2587_s29   ;;  %s2726_s0 = int_to_ptr.vmem [resolvable:$true] %s503_s0 }
  0x12   : > { %p1886_p0 = scmp.ge.s32.totalorder %s2587_s29, 1  ;;  %p467_p1 = scmp.lt.s32.totalorder %s2587_s29, 3 }
  0x13   : > { %p2722_p2 = scmp.eq.s32.totalorder %s1884_s19, 0  ;;  %s2590_s21 = smov [#allocation10]  }
  0x14   : > { %p2728_p3 = pnand %p1886_p0, %p467_p1  ;;  %s528_s22 = sshll.u32 %s2590_s21, 4  ;;  %s2734_s22 = int_to_ptr.vmem [resolvable:$true] %s528_s22 }
  0x15   : > { %s3204_s1 = scalar_select %p2722_p2, 1, 0 }
  0x16   : > { %s3205_s20 = scalar_select %p2728_p3, 1, 0 }
  0x17   : > { %p2130_p4 = pneg %p2728_p3  ;;  %s2591_s2 = smov [#allocation13]  }
  0x18   : > { %s549_s23 = sshll.u32 %s2591_s2, 4  ;;  %s2592_s25 = smov [#allocation16]   ;;  %s2742_s23 = int_to_ptr.vmem [resolvable:$true] %s549_s23 }
  0x19   : > { %p2738_p5 = pnand %p2722_p2, %p2130_p4  ;;  %s2744_s26 = sshll.u32 %s2592_s25, 4  ;;  %s578_s26 = int_to_ptr.vmem [resolvable:$true] %s2744_s26 }
  0x1a   : > { %s3207_s7 = sld [smem:[#allocation32_spill]] }
  0x1b   : > { %p2754_p7 = pneg %p2738_p5 }
  0x20   : > { %s2261_s21 = scalar_lea.hbm %s3207_s7, 16 }
  0x21   : > { %p2262_p6 = scmp.ne.s32.totalorder %s3207_s7, %s2261_s21  ;;  %p2268_p10 = scmp.lt.u32.totalorder %s2261_s21, %s3207_s7 }
  0x23   : > { %p2264_p8 = pnand %p2754_p7, %p2262_p6 }
  0x25   : > { %p2265_p9 = pneg %p2264_p8 }
  0x27   : > { %p2270_p11 = pnand %p2268_p10, %p2265_p9 }
  0x29   : > { %2273 = shalt.err (!%p2270_p11)
}
  0x2a   : > { %s2274_s18 = scalar_lea.vmem %s2726_s0, 16  ;;  %s2281_s29 = scalar_lea.vmem %s2726_s0, 32 }
  0x2b   : > { %p2275_p12 = scmp.ne.s32.totalorder %s2726_s0, %s2274_s18  ;;  %p2282_p1 = scmp.lt.s32.totalorder %s2726_s0, %s2726_s0 }
  0x2c   : > { %p2283_p4 = scmp.lt.s32.totalorder %s2281_s29, %s2274_s18 }
  0x2d   : > { %p2277_p13 = pnand %p2275_p12, %p2754_p7 }
  0x2e   : > { %p2284_p6 = por %p2283_p4, %p2282_p1 }
  0x2f   : > { %p2278_p0 = pneg %p2277_p13 }
  0x31   : > { %p2285_p8 = pnand %p2284_p6, %p2278_p0 }
  0x33   : > { %2288 = shalt.err (!%p2285_p8)
}
  0x34   : > { %2136 = dma.hbm_to_vmem [thread:$0]  (!%p2738_p5), %s3207_s7, 16, %s2726_s0, [#allocation8]  }
  0x35   : > { %s2289_s25 = scalar_lea.hbm %s3179_s10, 16 }
  0x36   : > { %p2290_p9 = scmp.ne.s32.totalorder %s3179_s10, %s2289_s25  ;;  %p2296_p12 = scmp.lt.u32.totalorder %s2289_s25, %s3179_s10 }
  0x38   : > { %p2292_p10 = pnand %p2290_p9, %p2754_p7 }
  0x3a   : > { %p2293_p11 = pneg %p2292_p10 }
  0x3c   : > { %p2298_p13 = pnand %p2296_p12, %p2293_p11 }
  0x3e   : > { %2301 = shalt.err (!%p2298_p13)
}
  0x3f   : > { %s2302_s0 = scalar_lea.vmem %s2734_s22, 16  ;;  %s2309_s3 = scalar_lea.vmem %s2734_s22, 32 }
  0x40   : > { %p2303_p0 = scmp.ne.s32.totalorder %s2734_s22, %s2302_s0  ;;  %p2310_p6 = scmp.lt.s32.totalorder %s2734_s22, %s2734_s22 }
  0x41   : > { %p2311_p8 = scmp.lt.s32.totalorder %s2309_s3, %s2302_s0 }
  0x42   : > { %p2305_p1 = pnand %p2303_p0, %p2754_p7 }
  0x43   : > { %p2312_p9 = por %p2311_p8, %p2310_p6 }
  0x44   : > { %p2306_p4 = pneg %p2305_p1 }
  0x46   : > { %p2313_p10 = pnand %p2312_p9, %p2306_p4 }
  0x48   : > { %2316 = shalt.err (!%p2313_p10)
}
  0x49   : > { %2142 = dma.hbm_to_vmem [thread:$0]  (!%p2738_p5), %s3179_s10, 16, %s2734_s22, [#allocation11]  }
  0x4a   : > { %s2317_s21 = scalar_lea.hbm %s3181_s12, 256 }
  0x4b   : > { %p2318_p11 = scmp.ne.s32.totalorder %s3181_s12, %s2317_s21  ;;  %p2324_p0 = scmp.lt.u32.totalorder %s2317_s21, %s3181_s12 }
  0x4d   : > { %p2320_p12 = pnand %p2318_p11, %p2754_p7 }
  0x4f   : > { %p2321_p13 = pneg %p2320_p12 }
  0x51   : > { %p2326_p1 = pnand %p2324_p0, %p2321_p13 }
  0x53   : > { %2329 = shalt.err (!%p2326_p1)
}
  0x54   : > { %s2330_s22 = scalar_lea.vmem %s2742_s23, 256  ;;  %p2338_p9 = scmp.lt.s32.totalorder %s2742_s23, %s2742_s23 }
  0x55   : > { %p2331_p4 = scmp.ne.s32.totalorder %s2742_s23, %s2330_s22  ;;  %p2339_p10 = scmp.lt.s32.totalorder %s2330_s22, %s2330_s22 }
  0x57   : > { %p2333_p6 = pnand %p2331_p4, %p2754_p7  ;;  %p2340_p11 = por %p2339_p10, %p2338_p9 }
  0x59   : > { %p2334_p8 = pneg %p2333_p6 }
  0x5b   : > { %p2341_p12 = pnand %p2340_p11, %p2334_p8 }
  0x5d   : > { %2344 = shalt.err (!%p2341_p12)
}
  0x5e   : > { %s2593_s3 = smov 64   ;;  %s2594_s8 = smov 4  }
  0x5f   : > { %2148 = dma.hbm_to_vmem [thread:$0]  (!%p2738_p5), %s3181_s12, 256, %s2742_s23, [#allocation14], %s2593_s3, %s2593_s3, %s2594_s8  }
  0x60   : > { %s2345_s25 = scalar_lea.hbm %s3184_s15, 16 }
  0x61   : > { %p2346_p13 = scmp.ne.s32.totalorder %s3184_s15, %s2345_s25  ;;  %p2352_p4 = scmp.lt.u32.totalorder %s2345_s25, %s3184_s15 }
  0x63   : > { %p2348_p0 = pnand %p2346_p13, %p2754_p7 }
  0x65   : > { %p2349_p1 = pneg %p2348_p0 }
  0x67   : > { %p2354_p6 = pnand %p2352_p4, %p2349_p1 }
  0x69   : > { %2357 = shalt.err (!%p2354_p6)
}
  0x6a   : > { %s2358_s14 = scalar_lea.vmem %s578_s26, 16  ;;  %s2365_s23 = scalar_lea.vmem %s578_s26, 32 }
  0x6b   : > { %p2359_p8 = scmp.ne.s32.totalorder %s578_s26, %s2358_s14  ;;  %p2366_p11 = scmp.lt.s32.totalorder %s578_s26, %s578_s26 }
  0x6c   : > { %p2367_p12 = scmp.lt.s32.totalorder %s2365_s23, %s2358_s14 }
  0x6d   : > { %p2361_p9 = pnand %p2359_p8, %p2754_p7 }
  0x6e   : > { %p2368_p2 = por %p2367_p12, %p2366_p11 }
  0x6f   : > { %p2362_p10 = pneg %p2361_p9 }
  0x71   : > { %p2369_p3 = pnand %p2368_p2, %p2362_p10 }
  0x73   : > { %2372 = shalt.err (!%p2369_p3)
}
  0x74   : > { %2154 = dma.hbm_to_vmem [thread:$0]  (!%p2738_p5), %s3184_s15, 16, %s578_s26, [#allocation17]  }
  0x75   : > { %s46_s30 = sadd.s32 1, %s2583_s28  ;;  %s2595_s19 = smov [#allocation5]  }
  0x76   : > { %s489_s21 = sshll.u32 %s2595_s19, 4  ;;  %p2843_p13 = scmp.ge.s32.totalorder %s46_s30, 2  ;;  %s490_s21 = int_to_ptr.vmem [resolvable:$true] %s489_s21 }
  0x77   : > { %s2373_s0 = scalar_lea.hbm %s3174_s5, 16 }
  0x78   : > { %s3209_s25 = scalar_select %p2843_p13, 1, 0 }
  0x79   : > { %p2374_p2 = scmp.ne.s32.totalorder %s3174_s5, %s2373_s0  ;;  %p2380_p1 = scmp.lt.u32.totalorder %s2373_s0, %s3174_s5 }
  0x7b   : > { %p2376_p3 = pnand %p2374_p2, %p2754_p7 }
  0x7d   : > { %p2377_p0 = pneg %p2376_p3 }
  0x7f   : > { %p2382_p4 = pnand %p2380_p1, %p2377_p0 }
  0x81   : > { %2385 = shalt.err (!%p2382_p4)
}
  0x82   : > { %s2386_s3 = scalar_lea.vmem %s490_s21, 16  ;;  %s2393_s8 = scalar_lea.vmem %s490_s21, 32 }
  0x83   : > { %p2387_p6 = scmp.ne.s32.totalorder %s490_s21, %s2386_s3  ;;  %p2394_p10 = scmp.lt.s32.totalorder %s490_s21, %s490_s21 }
  0x84   : > { %p2395_p11 = scmp.lt.s32.totalorder %s2393_s8, %s2386_s3 }
  0x85   : > { %p2389_p8 = pnand %p2387_p6, %p2754_p7 }
  0x86   : > { %p2396_p12 = por %p2395_p11, %p2394_p10 }
  0x87   : > { %p2390_p9 = pneg %p2389_p8 }
  0x89   : > { %p2397_p13 = pnand %p2396_p12, %p2390_p9 }
  0x8b   : > { %2400 = shalt.err (!%p2397_p13)
}
  0x8c   : > { %2133 = dma.hbm_to_vmem [thread:$0]  (!%p2738_p5), %s3174_s5, 16, %s490_s21, [#allocation6]  }
  0x8d   : > { %p3210_p2 = scmp.ne.s32.totalorder %s3209_s25, 0  ;;  %s2596_s29 = smov [#allocation9]  }
  0x8e   : > { %s517_s0 = sshll.u32 %s2596_s29, 4  ;;  %s2597_s22 = smov [#allocation12]   ;;  %s518_s0 = int_to_ptr.vmem [resolvable:$true] %s517_s0 }
  0x8f   : > { %s3225_s30 = smov (%p3210_p2, %s46_s30), 0  ;;  %s539_s14 = sshll.u32 %s2597_s22, 4  ;;  %s2869_s14 = int_to_ptr.vmem [resolvable:$true] %s539_s14 }
  0x90   : > { %s2401_s3 = scalar_lea.hbm %s3178_s9, 16 }
  0x91   : > { %p2402_p13 = scmp.ne.s32.totalorder %s3178_s9, %s2401_s3  ;;  %p2408_p1 = scmp.lt.u32.totalorder %s2401_s3, %s3178_s9 }
  0x93   : > { %p2404_p3 = pnand %p2402_p13, %p2754_p7 }
  0x95   : > { %p2405_p0 = pneg %p2404_p3 }
  0x97   : > { %p2410_p4 = pnand %p2408_p1, %p2405_p0 }
  0x99   : > { %2413 = shalt.err (!%p2410_p4)
}
  0x9a   : > { %s2414_s19 = scalar_lea.vmem %s518_s0, 16  ;;  %s2421_s18 = scalar_lea.vmem %s518_s0, 32 }
  0x9b   : > { %p2415_p6 = scmp.ne.s32.totalorder %s518_s0, %s2414_s19  ;;  %p2422_p10 = scmp.lt.s32.totalorder %s518_s0, %s518_s0 }
  0x9c   : > { %p2423_p11 = scmp.lt.s32.totalorder %s2421_s18, %s2414_s19 }
  0x9d   : > { %p2417_p8 = pnand %p2415_p6, %p2754_p7 }
  0x9e   : > { %p2424_p12 = por %p2423_p11, %p2422_p10 }
  0x9f   : > { %p2418_p9 = pneg %p2417_p8 }
  0xa1   : > { %p2425_p2 = pnand %p2424_p12, %p2418_p9 }
  0xa3   : > { %2428 = shalt.err (!%p2425_p2)
}
  0xa4   : > { %2139 = dma.hbm_to_vmem [thread:$0]  (!%p2738_p5), %s3178_s9, 16, %s518_s0, [#allocation8]  }
  0xa5   : > { %s2429_s23 = scalar_lea.hbm %s3180_s11, 16 }
  0xa6   : > { %p2430_p13 = scmp.ne.s32.totalorder %s3180_s11, %s2429_s23  ;;  %p2436_p1 = scmp.lt.u32.totalorder %s2429_s23, %s3180_s11 }
  0xa8   : > { %p2432_p3 = pnand %p2430_p13, %p2754_p7 }
  0xaa   : > { %p2433_p0 = pneg %p2432_p3 }
  0xac   : > { %p2438_p4 = pnand %p2436_p1, %p2433_p0 }
  0xae   : > { %2441 = shalt.err (!%p2438_p4)
}
  0xaf   : > { %s2442_s0 = scalar_lea.vmem %s2869_s14, 16  ;;  %s2449_s19 = scalar_lea.vmem %s2869_s14, 32 }
  0xb0   : > { %p2443_p6 = scmp.ne.s32.totalorder %s2869_s14, %s2442_s0  ;;  %p2450_p10 = scmp.lt.s32.totalorder %s2869_s14, %s2869_s14 }
  0xb1   : > { %p2451_p11 = scmp.lt.s32.totalorder %s2449_s19, %s2442_s0 }
  0xb2   : > { %p2445_p8 = pnand %p2443_p6, %p2754_p7 }
  0xb3   : > { %p2452_p12 = por %p2451_p11, %p2450_p10 }
  0xb4   : > { %p2446_p9 = pneg %p2445_p8 }
  0xb6   : > { %p2453_p2 = pnand %p2452_p12, %p2446_p9 }
  0xb8   : > { %2456 = shalt.err (!%p2453_p2)
}
  0xb9   : > { %2145 = dma.hbm_to_vmem [thread:$0]  (!%p2738_p5), %s3180_s11, 16, %s2869_s14, [#allocation11]  }
  0xba   : > { %s2598_s29 = smov [#allocation15]   ;;  %s2599_s26 = smov [#allocation18]  }
  0xbb   : > { %s563_s22 = sshll.u32 %s2598_s29, 4  ;;  %s588_s23 = sshll.u32 %s2599_s26, 4  ;;  %s564_s22 = int_to_ptr.vmem [resolvable:$true] %s563_s22  ;;  %s2913_s23 = int_to_ptr.vmem [resolvable:$true] %s588_s23 }
  0xbc   : > { %s2457_s21 = scalar_lea.hbm %s3182_s13, 16 }
  0xbd   : > { %p2458_p13 = scmp.ne.s32.totalorder %s3182_s13, %s2457_s21  ;;  %p2464_p1 = scmp.lt.u32.totalorder %s2457_s21, %s3182_s13 }
  0xbf   : > { %p2460_p3 = pnand %p2458_p13, %p2754_p7 }
  0xc1   : > { %p2461_p0 = pneg %p2460_p3 }
  0xc3   : > { %p2466_p4 = pnand %p2464_p1, %p2461_p0 }
  0xc5   : > { %2469 = shalt.err (!%p2466_p4)
}
  0xc6   : > { %s2470_s18 = scalar_lea.vmem %s564_s22, 16  ;;  %s2477_s7 = scalar_lea.vmem %s564_s22, 32 }
  0xc7   : > { %p2471_p6 = scmp.ne.s32.totalorder %s564_s22, %s2470_s18  ;;  %p2478_p10 = scmp.lt.s32.totalorder %s564_s22, %s564_s22 }
  0xc8   : > { %p2479_p11 = scmp.lt.s32.totalorder %s2477_s7, %s2470_s18 }
  0xc9   : > { %p2473_p8 = pnand %p2471_p6, %p2754_p7 }
  0xca   : > { %p2480_p12 = por %p2479_p11, %p2478_p10 }
  0xcb   : > { %p2474_p9 = pneg %p2473_p8 }
  0xcd   : > { %p2481_p2 = pnand %p2480_p12, %p2474_p9 }
  0xcf   : > { %2484 = shalt.err (!%p2481_p2)
}
  0xd0   : > { %2151 = dma.hbm_to_vmem [thread:$0]  (!%p2738_p5), %s3182_s13, 16, %s564_s22, [#allocation14]  }
  0xd1   : > { %s2485_s21 = scalar_lea.hbm %s3185_s16, 16 }
  0xd2   : > { %p2486_p13 = scmp.ne.s32.totalorder %s3185_s16, %s2485_s21  ;;  %p2492_p1 = scmp.lt.u32.totalorder %s2485_s21, %s3185_s16 }
  0xd4   : > { %p2488_p3 = pnand %p2486_p13, %p2754_p7 }
  0xd6   : > { %p2489_p0 = pneg %p2488_p3 }
  0xd8   : > { %p2494_p4 = pnand %p2492_p1, %p2489_p0 }
  0xda   : > { %2497 = shalt.err (!%p2494_p4)
}
  0xdb   : > { %s2498_s22 = scalar_lea.vmem %s2913_s23, 16  ;;  %s2505_s18 = scalar_lea.vmem %s2913_s23, 32 }
  0xdc   : > { %p2499_p6 = scmp.ne.s32.totalorder %s2913_s23, %s2498_s22  ;;  %p2506_p10 = scmp.lt.s32.totalorder %s2913_s23, %s2913_s23 }
  0xdd   : > { %p2507_p11 = scmp.lt.s32.totalorder %s2505_s18, %s2498_s22 }
  0xde   : > { %p2501_p8 = pnand %p2499_p6, %p2754_p7 }
  0xdf   : > { %p2508_p12 = por %p2507_p11, %p2506_p10 }
  0xe0   : > { %p2502_p9 = pneg %p2501_p8 }
  0xe2   : > { %p2509_p2 = pnand %p2508_p12, %p2502_p9 }
  0xe4   : > { %2512 = shalt.err (!%p2509_p2)
}
  0xe5   : > { %2157 = dma.hbm_to_vmem [thread:$0]  (!%p2738_p5), %s3185_s16, 16, %s2913_s23, [#allocation17]  }
  0xe6   : > { %s2600_s26 = smov [#allocation19]   ;;  %s2513_s25 = scalar_lea.hbm %s3186_s17, 16 }
  0xe7   : > { %s599_s3 = sshll.u32 %s2600_s26, 4  ;;  %p2514_p13 = scmp.ne.s32.totalorder %s3186_s17, %s2513_s25  ;;  %s600_s3 = int_to_ptr.vmem [resolvable:$true] %s599_s3 }
  0xe8   : > { %p2520_p1 = scmp.lt.u32.totalorder %s2513_s25, %s3186_s17 }
  0xe9   : > { %p2516_p3 = pnand %p2514_p13, %p2754_p7 }
  0xeb   : > { %p2517_p0 = pneg %p2516_p3 }
  0xed   : > { %p2522_p4 = pnand %p2520_p1, %p2517_p0 }
  0xef   : > { %2525 = shalt.err (!%p2522_p4)
}
  0xf0   : > { %s2526_s23 = scalar_lea.vmem %s600_s3, 16  ;;  %s2533_s18 = scalar_lea.vmem %s600_s3, 32 }
  0xf1   : > { %p2527_p6 = scmp.ne.s32.totalorder %s600_s3, %s2526_s23  ;;  %p2534_p10 = scmp.lt.s32.totalorder %s600_s3, %s600_s3 }
  0xf2   : > { %p2535_p11 = scmp.lt.s32.totalorder %s2533_s18, %s2526_s23 }
  0xf3   : > { %p2529_p8 = pnand %p2527_p6, %p2754_p7 }
  0xf4   : > { %p2536_p12 = por %p2535_p11, %p2534_p10 }
  0xf5   : > { %p2530_p9 = pneg %p2529_p8 }
  0xf7   : > { %p2537_p2 = pnand %p2536_p12, %p2530_p9 }
  0xf9   : > { %2540 = shalt.err (!%p2537_p2)
}
  0xfa   : > { %2160 = dma.hbm_to_vmem [thread:$0]  (!%p2738_p5), %s3186_s17, 16, %s600_s3, [#allocation20]  }
  0xfb   : > { %p3211_p13 = scmp.ne.s32.totalorder %s3205_s20, 0 }
  0xfc   : > { %p3212_p3 = scmp.ne.s32.totalorder (!%p3211_p13), %s3204_s1, 0 }
  0xfd   : > { %625 = sbr.rel (%p3211_p13) target bundleno = 2638 (0xa4e), region = 92 }
 0x104   : > { %2554 = dma.done.wait (%p3212_p3), [#allocation6], 16  }
 0x105   : > { %2556 = vsyncadd (%p3212_p3), [#allocation6], 4294967280 }
 0x106   : > { %2558 = dma.done.wait (%p3212_p3), [#allocation8], 32  }
 0x107   : > { %2560 = vsyncadd (%p3212_p3), [#allocation8], 4294967264 }
 0x108   : > { %2562 = dma.done.wait (%p3212_p3), [#allocation11], 32  }
 0x109   : > { %2564 = vsyncadd (%p3212_p3), [#allocation11], 4294967264 }
 0x10a   : > { %2566 = dma.done.wait (%p3212_p3), [#allocation14], 272  }
 0x10b   : > { %2568 = vsyncadd (%p3212_p3), [#allocation14], 4294967024 }
 0x10c   : > { %2570 = dma.done.wait (%p3212_p3), [#allocation17], 32  }
 0x10d   : > { %2572 = vsyncadd (%p3212_p3), [#allocation17], 4294967264 }
 0x10e   : > { %2574 = dma.done.wait (%p3212_p3), [#allocation20], 16  }
 0x10f   : > { %2576 = vsyncadd (%p3212_p3), [#allocation20], 4294967280  ;;  %p719_p5 = scmp.lt.s32.totalorder %s2579_s27, 1  ;;  %v2601_v0 = vmov 0.0   ;;  %vm2602_vm0 = vmmov 0   ;;  %s3213_s2 = sld [smem:[#allocation28_spill]]  ;;  %v954_v45 = vlaneseq }
 0x110   : > { %1990 = vmatprep.subr.bf16.mxu0 %v2601_v0  ;;  %1994 = vmatprep.mubr.msk.bf16.mxu0 %vm2602_vm0, %v2601_v0  ;;  %v2225_v1 = vld [vmem:[%s3173_s4] sm:$0xff]   ;;  %v2226_v2 = vld [vmem:[%s3173_s4 + $0x8] sm:$0xff]   ;;  %vm763_vm1 = vcmask 261120   ;;  %s3214_s14 = sld [smem:[#allocation30_spill]]  ;;  %v1911_v9 = vld [vmem:[#allocation5] ss:$0 sm:$0xff] }
 0x111   : > { %s3227_s27 = smov (!%p719_p5, %s2579_s27), 1  ;;  %1998 = vmatprep.subr.bf16.mxu1 %v2601_v0  ;;  %2002 = vmatprep.mubr.msk.bf16.mxu1 %vm2602_vm0, %v2601_v0  ;;  %v2229_v7 = vld [vmem:[%s3175_s6] sm:$0xff]   ;;  %v2230_v8 = vld [vmem:[%s3175_s6 + $0x8] sm:$0xff]   ;;  %vm871_vm2 = vcmask 257024   ;;  %vm959_vm3 = vcmask 64512   ;;  %s2603_s3 = smov 112  }
 0x112   : > { %s1909_s1 = sshll.u32 %s3227_s27, 3  ;;  %1991 = vmatpush3.bf16.msra.mxu0 %v2225_v1  ;;  %1999 = vmatpush3.bf16.msra.mxu1 %v2229_v7  ;;  %s2604_s8 = smov 120   ;;  %v1915_v27 = vld [vmem:[#allocation7] ss:$0 sm:$0xff]  ;;  %vm1019_vm4 = vcmask 1043456   ;;  %v955_v48 = vshrl.u32 %v954_v45, 7 }
 0x113   : > { %1992 = vmatprep.subr.bf16.mxu0 %v2601_v0  ;;  %2000 = vmatprep.subr.bf16.mxu1 %v2601_v0  ;;  %s2605_s21 = smov 104   ;;  %s3216_s19 = sld [smem:[#allocation29_spill]]  ;;  %vm1187_vm5 = vcmask 130112   ;;  %vm1303_vm6 = vcmask 195712   ;;  %vm1419_vm7 = vcmask 261312   ;;  %vm1628_vm8 = vcmask 523264  }
 0x114   : > { %v956_v50 = vsub.s32 0, %v955_v48  ;;  %s2606_s23 = smov 8   ;;  %s3217_s29 = sld [smem:[#allocation33_spill]] }
 0x115   : > { %s722_s26 = scalar_lea.vmem %s3213_s2, %s1909_s1  ;;  %s3219_s25 = sld [smem:[#allocation34_spill]] }
 0x116   : > { %v3023_v3 = vld [vmem:[%s722_s26] sm:$0xff]  ;;  %1993 = vmatpush3.bf16.msra.mxu0 %v2226_v2  ;;  %v2228_v6 = vld [vmem:[%s3214_s14 + $0x8] sm:$0xff]   ;;  %2001 = vmatpush3.bf16.msra.mxu1 %v2230_v8  ;;  %s3215_s26 = sld [smem:[#allocation31_spill]]  ;;  %s3220_s2 = sld [smem:[#allocation35_spill]] }
 0x117   : > { %v2227_v4 = vld [vmem:[%s3214_s14] sm:$0xff]   ;;  %v739_v5 = vpack.c.bf16 %v3023_v3, %v3023_v3  ;;  %2006 = vmatprep.subr.bf16.mxu0 %v2601_v0  ;;  %2014 = vmatprep.subr.bf16.mxu1 %v2601_v0 }
 0x119   : > { %1995 = vmatmul.mubr.msk.bf16.vlgmr.msra.gmra.mrb[0].mxu0 %vm763_vm1, %v739_v5  ;;  %2003 = vmatmul.mubr.msk.bf16.vlgmr.msra.gmra.mrb[0].mxu1 %vm763_vm1, %v739_v5  ;;  %s725_s22 = scalar_lea.vmem %s3216_s19, %s3227_s27 }
 0x11a   : > { %2007 = vmatpush3.bf16.msra.mxu0 %v2227_v4  ;;  %2010 = vmatprep.mubr.msk.bf16.mxu0 %vm2602_vm0, %v2601_v0  ;;  %v948_v46 = vld [vmem:[%s725_s22] sm:$0x1]  ;;  %s3218_s20 = smov %s3217_s29 }
 0x11b   : > { %2008 = vmatprep.subr.bf16.mxu0 %v2601_v0  ;;  %2016 = vmatprep.mubr.msk.bf16.mxu1 %vm2602_vm0, %v2601_v0  ;;  %v1923_v47 = vadd.f32 -1.0, %v948_v46 }
 0x11c   : > { %v1919_v16 = vld [vmem:[%s3215_s26] ss:$0 sm:$0xff]  ;;  %s2607_s26 = smov 16  }
 0x11d   : > { %v950_v49 = vmul.f32 1e+09, %v1923_v47 }
 0x11e   : > { %2009 = vmatpush3.bf16.msra.mxu0 %v2228_v6 }
 0x11f   : > { %2020 = vmatprep.subr.bf16.mxu0 %v2601_v0  ;;  %v957_v51 = vrot.slane %v950_v49, %v956_v50 }
 0x121   : > { %2011 = vmatmul.mubr.msk.bf16.vlgmr.msra.gmra.mrb[4].mxu0 %vm763_vm1, %v739_v5 }
 0x122   : > { %2022 = vmatprep.mubr.msk.bf16.mxu0 %vm2602_vm0, %v2601_v0 }
 0x1ec   : > { %v801_v10 = vpop.f32.mrb[0].mxu0  ;;  %v864_v28 = vpop.f32.mrb[0].mxu1 }
 0x1ed   : > { %v802_v11 = vadd.f32 %v1911_v9, %v801_v10  ;;  %v1996_v12 = vpop.f32.mrb[1].mxu0  ;;  %v865_v29 = vadd.f32 %v1915_v27, %v864_v28  ;;  %v2004_v30 = vpop.f32.mrb[1].mxu1 }
 0x1ee   : > { %v804_v13 = vpop.f32.mrb[2].mxu0  ;;  %v867_v31 = vpop.f32.mrb[2].mxu1 }
 0x1ef   : > { %v870_v14 = vpack.c.bf16 %v802_v11, %v802_v11  ;;  %v1997_v15 = vpop.f32.mrb[3].mxu0  ;;  %v873_v32 = vpack.c.bf16 %v865_v29, %v865_v29  ;;  %v2005_v33 = vpop.f32.mrb[3].mxu1 }
 0x1f1   : > { %872 = vst.msk [vmem:[#allocation2] sm:$0xf] %vm871_vm2, %v870_v14  ;;  %874 = vst.msk [vmem:[#allocation3] sm:$0xf] %vm871_vm2, %v873_v32 }
 0x1f4   : > { %v940_v17 = vpop.f32.mrb[4].mxu0 }
 0x1f5   : > { %v941_v18 = vadd.f32 %v1919_v16, %v940_v17  ;;  %v2012_v19 = vpop.f32.mrb[5].mxu0 }
 0x1f6   : > { %v943_v20 = vpop.f32.mrb[6].mxu0 }
 0x1f7   : > { %v946_v21 = vmul.f32 0.35355338, %v941_v18  ;;  %v2013_v22 = vpop.f32.mrb[7].mxu0 }
 0x1f8   : > { %v951_v23 = vld [vmem:[#allocation2] sm:$0xf]  ;;  %v952_v34 = vld [vmem:[#allocation3] sm:$0xf] }
 0x1f9   : > { %v964_v24 = vsel %vm959_vm3, %v951_v23, 0  ;;  %v1926_v25 = vcombine.low %v951_v23, %v951_v23  ;;  %v947_v26 = vpack.c.bf16 %v946_v21, %v946_v21  ;;  %v1021_v35 = vsel %vm1019_vm4, %v952_v34, 0 }
 0x1fa   : > { %2015 = vmatpush3.bf16.xpose.msra.mxu1 %v964_v24  ;;  %2021 = vmatpush3.bf16.msra.mxu0 %v1021_v35  ;;  %v1928_v14 = vcombine.low %v952_v34, %v952_v34 }
 0x1fb   : > { %1191 = vrot.lane.b32.xlu1 %v1926_v25, %s2603_s3  ;;  %1072 = vrot.lane.b32.xlu0 %v1926_v25, %s2604_s8 }
 0x1fc   : > { %2026 = vmatprep.subr.bf16.mxu1 %v2601_v0  ;;  %2032 = vmatprep.subr.bf16.mxu0 %v2601_v0 }
 0x1ff   : > { %1189 = vrot.lane.b32.xlu1 %v947_v26, %s2603_s3  ;;  %1067 = vrot.lane.b32.xlu0 %v947_v26, %s2604_s8 }
 0x201   : > { %2017 = vmatmul.mubr.msk.bf16.vlgmr.msra.gmra.mrb[4].mxu1 %vm959_vm3, %v947_v26 }
 0x202   : > { %2028 = vmatprep.mubr.msk.bf16.mxu1 %vm2602_vm0, %v2601_v0 }
 0x203   : > { %1305 = vrot.lane.b32.xlu1 %v947_v26, %s2605_s21  ;;  %1307 = vrot.lane.b32.xlu0 %v1926_v25, %s2605_s21 }
 0x26d   : > { %v1073_v36 = vpop.permute.xlu0 %1072  ;;  %v1192_v38 = vpop.permute.xlu1 %1191 }
 0x26e   : > { %v1078_v37 = vsel %vm959_vm3, %v1073_v36, 0  ;;  %v1197_v40 = vsel %vm959_vm3, %v1192_v38, 0 }
 0x26f   : > { %2027 = vmatpush3.bf16.xpose.msra.mxu1 %v1078_v37 }
 0x270   : > { %2038 = vmatprep.subr.bf16.mxu1 %v2601_v0 }
 0x271   : > { %v1068_v39 = vpop.permute.xlu0 %1067  ;;  %v1190_v42 = vpop.permute.xlu1 %1189 }
 0x275   : > { %v1308_v41 = vpop.permute.xlu0 %1307  ;;  %v1306_v44 = vpop.permute.xlu1 %1305 }
 0x276   : > { %2029 = vmatmul.mubr.msk.bf16.vlgmr.msra.gmra.mrb[8].mxu1 %vm959_vm3, %v1068_v39  ;;  %v1313_v43 = vsel %vm959_vm3, %v1308_v41, 0 }
 0x277   : > { %2039 = vmatpush3.bf16.xpose.msra.mxu1 %v1197_v40  ;;  %2040 = vmatprep.mubr.msk.bf16.mxu1 %vm2602_vm0, %v2601_v0 }
 0x278   : > { %2050 = vmatprep.subr.bf16.mxu1 %v2601_v0 }
 0x27e   : > { %2041 = vmatmul.mubr.msk.bf16.vlgmr.msra.gmra.mrb[12].mxu1 %vm959_vm3, %v1190_v42 }
 0x27f   : > { %2051 = vmatpush3.bf16.xpose.msra.mxu1 %v1313_v43  ;;  %2052 = vmatprep.mubr.msk.bf16.mxu1 %vm2602_vm0, %v2601_v0 }
 0x280   : > { %2062 = vmatprep.subr.bf16.mxu1 %v2601_v0 }
 0x286   : > { %2053 = vmatmul.mubr.msk.bf16.vlgmr.msra.gmra.mrb[16].mxu1 %vm959_vm3, %v1306_v44 }
 0x287   : > { %2066 = vmatprep.mubr.msk.bf16.mxu1 %vm2602_vm0, %v2601_v0 }
 0x2d4   : > { %v1000_v52 = vpop.f32.mrb[4].mxu1 }
 0x2d5   : > { %v1001_v53 = vadd.f32 %v1000_v52, %v957_v51  ;;  %v2018_v54 = vpop.f32.mrb[5].mxu1 }
 0x2d6   : > { %v1003_v55 = vpop.f32.mrb[6].mxu1 }
 0x2d7   : > { %v2019_v56 = vpop.f32.mrb[7].mxu1  ;;  %v1006_v57 = vsel %vm959_vm3, %v1001_v53, -inf }
 0x2d8   : > { %1007 = vmax.xlane.f32.xlu0 %v1006_v57 }
 0x349   : > { %v1114_v58 = vpop.f32.mrb[8].mxu1 }
 0x34a   : > { %v1115_v59 = vadd.f32 %v1114_v58, %v957_v51  ;;  %v2030_v60 = vpop.f32.mrb[9].mxu1 }
 0x34b   : > { %v1117_v61 = vpop.f32.mrb[10].mxu1 }
 0x34c   : > { %v2031_v62 = vpop.f32.mrb[11].mxu1  ;;  %v1120_v63 = vsel %vm959_vm3, %v1115_v59, -inf  ;;  %v2233_v61 = vld [vmem:[%s3217_s29] sm:$0xff]  }
 0x34d   : > { %1121 = vmax.xlane.f32.xlu1 %v1120_v63  ;;  %2063 = vmatpush3.bf16.msra.mxu1 %v2233_v61 }
 0x34e   : > { %2064 = vmatprep.subr.bf16.mxu1 %v2601_v0 }
 0x351   : > { %v1233_v1 = vpop.f32.mrb[12].mxu1 }
 0x352   : > { %v1234_v2 = vadd.f32 %v1233_v1, %v957_v51  ;;  %v2042_v4 = vpop.f32.mrb[13].mxu1  ;;  %v2234_v1 = vld [vmem:[%s3218_s20 + $0x8] sm:$0xff]  }
 0x353   : > { %v1236_v5 = vpop.f32.mrb[14].mxu1  ;;  %2065 = vmatpush3.bf16.msra.mxu1 %v2234_v1 }
 0x354   : > { %v2043_v6 = vpop.f32.mrb[15].mxu1  ;;  %v1239_v7 = vsel %vm959_vm3, %v1234_v2, -inf  ;;  %2078 = vmatprep.subr.bf16.mxu1 %v2601_v0 }
 0x355   : > { %1240 = vmax.xlane.f32.xlu0 %v1239_v7 }
 0x359   : > { %v1349_v8 = vpop.f32.mrb[16].mxu1 }
 0x35a   : > { %v1350_v9 = vadd.f32 %v1349_v8, %v957_v51  ;;  %v2054_v10 = vpop.f32.mrb[17].mxu1 }
 0x35b   : > { %v1352_v11 = vpop.f32.mrb[18].mxu1 }
 0x35c   : > { %v2055_v12 = vpop.f32.mrb[19].mxu1  ;;  %v1355_v13 = vsel %vm959_vm3, %v1350_v9, -inf }
 0x35d   : > { %1356 = vmax.xlane.f32.xlu0 %v1355_v13 }
 0x35e   : > { %1133 = vrot.lane.b32.xlu1 %v1928_v14, %s2604_s8 }
 0x362   : > { %1365 = vrot.lane.b32.xlu1 %v1928_v14, %s2605_s21 }
 0x365   : > { %v1008_v15 = vpop.xlane.xlu0 %1007 }
 0x366   : > { %v1009_v16 = vsub.f32 %v1001_v53, %v1008_v15 }
 0x368   : > { %v1010_v17 = vmul.f32 1.442695, %v1009_v16 }
 0x36a   : > { %2241 = vpow2.f32 %v1010_v17 }
 0x373   : > { %1249 = vrot.lane.b32.xlu0 %v1928_v14, %s2603_s3  ;;  %s2608_s3 = smov 24  }
 0x374   : > { %v2242_v18 = vpop.eup %2241 }
 0x375   : > { %v1015_v19 = vpack.c.bf16 %v2242_v18, %v2242_v18  ;;  %v1012_v35 = vsel %vm959_vm3, %v2242_v18, 0.0  ;;  %v1934_v18 = vld [vmem:[#allocation9] ss:$0 sm:$0xff] }
 0x377   : > { %2023 = vmatmul.mubr.msk.bf16.vlgmr.msra.gmra.mrb[8].mxu0 %vm959_vm3, %v1015_v19 }
 0x378   : > { %2034 = vmatprep.mubr.msk.bf16.mxu0 %vm2602_vm0, %v2601_v0 }
 0x3da   : > { %v1122_v20 = vpop.xlane.xlu1 %1121 }
 0x3db   : > { %v1123_v21 = vsub.f32 %v1115_v59, %v1122_v20 }
 0x3dd   : > { %v1124_v22 = vmul.f32 1.442695, %v1123_v21 }
 0x3de   : > { %v1134_v23 = vpop.permute.xlu1 %1133 }
 0x3df   : > { %2243 = vpow2.f32 %v1124_v22  ;;  %v1139_v24 = vsel %vm1019_vm4, %v1134_v23, 0 }
 0x3e0   : > { %2033 = vmatpush3.bf16.msra.mxu0 %v1139_v24 }
 0x3e1   : > { %2044 = vmatprep.subr.bf16.mxu0 %v2601_v0 }
 0x3e2   : > { %v1241_v25 = vpop.xlane.xlu0 %1240  ;;  %v1366_v38 = vpop.permute.xlu1 %1365 }
 0x3e3   : > { %v1242_v26 = vsub.f32 %v1234_v2, %v1241_v25  ;;  %v1371_v41 = vsel %vm1019_vm4, %v1366_v38, 0  ;;  %v1938_v38 = vld [vmem:[#allocation10] ss:$0 sm:$0xff] }
 0x3e5   : > { %v1243_v27 = vmul.f32 1.442695, %v1242_v26 }
 0x3e7   : > { %2245 = vpow2.f32 %v1243_v27 }
 0x3e9   : > { %v2244_v28 = vpop.eup %2243 }
 0x3ea   : > { %v1357_v29 = vpop.xlane.xlu0 %1356  ;;  %v1126_v30 = vsel %vm959_vm3, %v2244_v28, 0.0  ;;  %v1129_v31 = vpack.c.bf16 %v2244_v28, %v2244_v28 }
 0x3eb   : > { %v1358_v32 = vsub.f32 %v1350_v9, %v1357_v29  ;;  %1127 = vadd.xlane.f32.xlu1 %v1126_v30 }
 0x3ec   : > { %2035 = vmatmul.mubr.msk.bf16.vlgmr.msra.gmra.mrb[12].mxu0 %vm959_vm3, %v1129_v31  ;;  %v2235_v31 = vld [vmem:[#allocation13] sm:$0xff]  }
 0x3ed   : > { %v1359_v33 = vmul.f32 1.442695, %v1358_v32  ;;  %2046 = vmatprep.mubr.msk.bf16.mxu0 %vm2602_vm0, %v2601_v0  ;;  %v2236_v32 = vld [vmem:[#allocation13 + $0x8] sm:$0xff]  }
 0x3ee   : > { %v1250_v34 = vpop.permute.xlu0 %1249 }
 0x3ef   : > { %2247 = vpow2.f32 %v1359_v33  ;;  %v1255_v36 = vsel %vm1019_vm4, %v1250_v34, 0  ;;  %1013 = vadd.xlane.f32.xlu1 %v1012_v35  ;;  %v2238_v33 = vld [vmem:[%s3219_s25 + $0x8] sm:$0xff]  }
 0x3f0   : > { %2045 = vmatpush3.bf16.msra.mxu0 %v1255_v36 }
 0x3f1   : > { %v2246_v37 = vpop.eup %2245  ;;  %2056 = vmatprep.subr.bf16.mxu0 %v2601_v0 }
 0x3f2   : > { %v1245_v39 = vsel %vm959_vm3, %v2246_v37, 0.0  ;;  %v1248_v40 = vpack.c.bf16 %v2246_v37, %v2246_v37 }
 0x3f3   : > { %1246 = vadd.xlane.f32.xlu0 %v1245_v39 }
 0x3f4   : > { %2047 = vmatmul.mubr.msk.bf16.vlgmr.msra.gmra.mrb[16].mxu0 %vm959_vm3, %v1248_v40  ;;  %v1939_v40 = vld [vmem:[#allocation12] ss:$0 sm:$0xff] }
 0x3f5   : > { %2057 = vmatpush3.bf16.msra.mxu0 %v1371_v41  ;;  %2058 = vmatprep.mubr.msk.bf16.mxu0 %vm2602_vm0, %v2601_v0 }
 0x3f6   : > { %2070 = vmatprep.subr.bf16.mxu0 %v2601_v0 }
 0x3f9   : > { %v2248_v42 = vpop.eup %2247 }
 0x3fa   : > { %v1361_v43 = vsel %vm959_vm3, %v2248_v42, 0.0  ;;  %v1364_v44 = vpack.c.bf16 %v2248_v42, %v2248_v42 }
 0x3fb   : > { %1362 = vadd.xlane.f32.xlu0 %v1361_v43 }
 0x3fc   : > { %2059 = vmatmul.mubr.msk.bf16.vlgmr.msra.gmra.mrb[20].mxu0 %vm959_vm3, %v1364_v44  ;;  %v2239_v44 = vld [vmem:[%s3219_s25 + $0x10] sm:$0xff]  }
 0x3fd   : > { %2074 = vmatprep.mubr.msk.bf16.mxu0 %vm2602_vm0, %v2601_v0  ;;  %2071 = vmatpush3.bf16.msra.mxu0 %v2235_v31 }
 0x3fe   : > { %2072 = vmatprep.subr.bf16.mxu0 %v2601_v0 }
 0x401   : > { %2073 = vmatpush3.bf16.msra.mxu0 %v2236_v32 }
 0x44a   : > { %v1057_v45 = vpop.f32.mrb[8].mxu0 }
 0x44b   : > { %v2024_v46 = vpop.f32.mrb[9].mxu0 }
 0x44c   : > { %v1060_v47 = vpop.f32.mrb[10].mxu0  ;;  %v1940_v46 = vld [vmem:[#allocation15] ss:$0 sm:$0xff] }
 0x44d   : > { %v2025_v48 = vpop.f32.mrb[11].mxu0 }
 0x478   : > { %v1128_v49 = vpop.xlane.xlu1 %1127 }
 0x47c   : > { %v1014_v50 = vpop.xlane.xlu1 %1013 }
 0x47d   : > { %2249 = vrcp.f32 %v1014_v50 }
 0x47e   : > { %2251 = vrcp.f32 %v1128_v49 }
 0x480   : > { %v1247_v53 = vpop.xlane.xlu0 %1246 }
 0x481   : > { %2253 = vrcp.f32 %v1247_v53 }
 0x487   : > { %v2250_v51 = vpop.eup %2249 }
 0x488   : > { %v1064_v52 = vmul.f32 %v2250_v51, %v1057_v45  ;;  %v2252_v54 = vpop.eup %2251  ;;  %v1363_v59 = vpop.xlane.xlu0 %1362  ;;  %v2240_v45 = vld [vmem:[%s3219_s25 + $0x18] sm:$0xff]  }
 0x489   : > { %2255 = vrcp.f32 %v1363_v59 }
 0x48a   : > { %1065 = vst.msk [vmem:[#allocation4] sm:$0xff] %vm959_vm3, %v1064_v52 }
 0x48b   : > { %v2254_v62 = vpop.eup %2253 }
 0x493   : > { %v2256_v7 = vpop.eup %2255 }
 0x4bf   : > { %v1175_v55 = vpop.f32.mrb[12].mxu0 }
 0x4c0   : > { %v1182_v56 = vmul.f32 %v2252_v54, %v1175_v55  ;;  %v2036_v57 = vpop.f32.mrb[13].mxu0  ;;  %v1944_v54 = vld [vmem:[#allocation16] ss:$0 sm:$0xff] }
 0x4c1   : > { %v1178_v58 = vpop.f32.mrb[14].mxu0 }
 0x4c2   : > { %1184 = vrot.lane.b32.xlu0 %v1182_v56, %s2606_s23  ;;  %v2037_v60 = vpop.f32.mrb[15].mxu0 }
 0x4c7   : > { %v1291_v63 = vpop.f32.mrb[16].mxu0 }
 0x4c8   : > { %v1298_v2 = vmul.f32 %v2254_v62, %v1291_v63  ;;  %v2048_v4 = vpop.f32.mrb[17].mxu0 }
 0x4c9   : > { %v1294_v5 = vpop.f32.mrb[18].mxu0 }
 0x4ca   : > { %1300 = vrot.lane.b32.xlu1 %v1298_v2, %s2607_s26  ;;  %v2049_v6 = vpop.f32.mrb[19].mxu0  ;;  %s732_s26 = scalar_lea.vmem %s3220_s2, %s1909_s1 }
 0x4cf   : > { %v1407_v8 = vpop.f32.mrb[20].mxu0 }
 0x4d0   : > { %v1414_v9 = vmul.f32 %v2256_v7, %v1407_v8  ;;  %v2060_v10 = vpop.f32.mrb[21].mxu0  ;;  %v1950_v8 = vld [vmem:[#allocation18] ss:$0 sm:$0xff] }
 0x4d1   : > { %v1410_v11 = vpop.f32.mrb[22].mxu0  ;;  %v1951_v10 = vld [vmem:[#allocation19] ss:$0 sm:$0xff] }
 0x4d2   : > { %1416 = vrot.lane.b32.xlu1 %v1414_v9, %s2608_s3  ;;  %v2061_v12 = vpop.f32.mrb[23].mxu0 }
 0x534   : > { %v1185_v13 = vpop.permute.xlu0 %1184 }
 0x535   : > { %1188 = vst.msk [vmem:[#allocation4] sm:$0xff] %vm1187_vm5, %v1185_v13 }
 0x53c   : > { %v1301_v14 = vpop.permute.xlu1 %1300 }
 0x53d   : > { %1304 = vst.msk [vmem:[#allocation4] sm:$0xff] %vm1303_vm6, %v1301_v14 }
 0x544   : > { %v1417_v15 = vpop.permute.xlu1 %1416 }
 0x545   : > { %1420 = vst.msk [vmem:[#allocation4] sm:$0xff] %vm1419_vm7, %v1417_v15 }
 0x54c   : > { %v1421_v16 = vld [vmem:[#allocation4] sm:$0xff] }
 0x54d   : > { %v1422_v17 = vpack.c.bf16 %v1421_v16, %v1421_v16 }
 0x54f   : > { %2067 = vmatmul.mubr.msk.bf16.vlgmr.msra.gmra.mrb[20].mxu1 %vm763_vm1, %v1422_v17 }
 0x550   : > { %2086 = vmatprep.mubr.msk.bf16.mxu1 %vm2602_vm0, %v2601_v0 }
 0x622   : > { %v1483_v19 = vpop.f32.mrb[20].mxu1 }
 0x623   : > { %v1484_v20 = vadd.f32 %v1934_v18, %v1483_v19  ;;  %v2068_v21 = vpop.f32.mrb[21].mxu1 }
 0x624   : > { %v1486_v22 = vpop.f32.mrb[22].mxu1 }
 0x625   : > { %v2069_v23 = vpop.f32.mrb[23].mxu1  ;;  %v1489_v24 = vadd.f32 %v1484_v20, %v3023_v3  ;;  %v2237_v3 = vld [vmem:[%s3219_s25] sm:$0xff]  }
 0x626   : > { %2079 = vmatpush3.bf16.msra.mxu1 %v2237_v3 }
 0x627   : > { %v1492_v25 = vsel %vm763_vm1, %v1489_v24, 0.0  ;;  %2080 = vmatprep.subr.bf16.mxu1 %v2601_v0 }
 0x628   : > { %1493 = vadd.xlane.f32.xlu0 %v1492_v25 }
 0x62a   : > { %2081 = vmatpush3.bf16.msra.mxu1 %v2238_v33 }
 0x62b   : > { %2082 = vmatprep.subr.bf16.mxu1 %v2601_v0 }
 0x62e   : > { %2083 = vmatpush3.bf16.msra.mxu1 %v2239_v44 }
 0x62f   : > { %2084 = vmatprep.subr.bf16.mxu1 %v2601_v0 }
 0x632   : > { %2085 = vmatpush3.bf16.msra.mxu1 %v2240_v45 }
 0x6b5   : > { %v1494_v26 = vpop.xlane.xlu0 %1493 }
 0x6b6   : > { %v1496_v27 = vmul.f32 0.03125, %v1494_v26 }
 0x6b8   : > { %v1497_v28 = vsub.f32 %v1489_v24, %v1496_v27 }
 0x6ba   : > { %v1498_v29 = vmul.f32 %v1497_v28, %v1497_v28 }
 0x6bc   : > { %v1499_v30 = vsel %vm763_vm1, %v1498_v29, 0.0 }
 0x6bd   : > { %1500 = vadd.xlane.f32.xlu1 %v1499_v30 }
 0x74a   : > { %v1501_v34 = vpop.xlane.xlu1 %1500 }
 0x74b   : > { %v1502_v35 = vmul.f32 0.03125, %v1501_v34 }
 0x74d   : > { %v1503_v36 = vadd.f32 1e-06, %v1502_v35 }
 0x74f   : > { %2257 = vrsqrt.f32 %v1503_v36 }
 0x759   : > { %v2258_v37 = vpop.eup %2257 }
 0x75a   : > { %v1505_v39 = vmul.f32 %v2258_v37, %v1497_v28 }
 0x75c   : > { %v1512_v41 = vmul.f32 %v1938_v38, %v1505_v39 }
 0x75e   : > { %v1519_v42 = vadd.f32 %v1939_v40, %v1512_v41 }
 0x760   : > { %v1520_v43 = vpack.c.bf16 %v1519_v42, %v1519_v42 }
 0x762   : > { %2075 = vmatmul.mubr.msk.bf16.vlgmr.msra.gmra.mrb[24].mxu0 %vm763_vm1, %v1520_v43 }
 0x835   : > { %v1581_v47 = vpop.f32.mrb[24].mxu0 }
 0x836   : > { %v1582_v48 = vadd.f32 %v1940_v46, %v1581_v47  ;;  %v2076_v49 = vpop.f32.mrb[25].mxu0 }
 0x837   : > { %v1584_v50 = vpop.f32.mrb[26].mxu0 }
 0x838   : > { %v1587_v51 = vmax.f32 %v1582_v48, 0.0  ;;  %v2077_v52 = vpop.f32.mrb[27].mxu0 }
 0x83a   : > { %v1588_v53 = vpack.c.bf16 %v1587_v51, %v1587_v51 }
 0x83c   : > { %2087 = vmatmul.mubr.msk.bf16.vlgmr.msra.gmra.mrb[24].mxu1 %vm1628_vm8, %v1588_v53 }
 0x90f   : > { %v1666_v55 = vpop.f32.mrb[24].mxu1 }
 0x910   : > { %v1667_v56 = vadd.f32 %v1944_v54, %v1666_v55  ;;  %v2088_v57 = vpop.f32.mrb[25].mxu1 }
 0x911   : > { %v1669_v0 = vpop.f32.mrb[26].mxu1 }
 0x912   : > { %v2089_v58 = vpop.f32.mrb[27].mxu1  ;;  %v1672_v59 = vadd.f32 %v1667_v56, %v1519_v42 }
 0x914   : > { %v1675_v60 = vsel %vm763_vm1, %v1672_v59, 0.0 }
 0x915   : > { %1676 = vadd.xlane.f32.xlu0 %v1675_v60 }
 0x9a2   : > { %v1677_v61 = vpop.xlane.xlu0 %1676 }
 0x9a3   : > { %v1678_v62 = vmul.f32 0.03125, %v1677_v61 }
 0x9a5   : > { %v1679_v63 = vsub.f32 %v1672_v59, %v1678_v62 }
 0x9a7   : > { %v1680_v1 = vmul.f32 %v1679_v63, %v1679_v63 }
 0x9a9   : > { %v1681_v2 = vsel %vm763_vm1, %v1680_v1, 0.0 }
 0x9aa   : > { %1682 = vadd.xlane.f32.xlu0 %v1681_v2 }
 0xa37   : > { %v1683_v4 = vpop.xlane.xlu0 %1682 }
 0xa38   : > { %v1684_v5 = vmul.f32 0.03125, %v1683_v4 }
 0xa3a   : > { %v1685_v6 = vadd.f32 1e-06, %v1684_v5 }
 0xa3c   : > { %2259 = vrsqrt.f32 %v1685_v6 }
 0xa46   : > { %v2260_v7 = vpop.eup %2259 }
 0xa47   : > { %v1687_v9 = vmul.f32 %v2260_v7, %v1679_v63 }
 0xa49   : > { %v1694_v11 = vmul.f32 %v1950_v8, %v1687_v9 }
 0xa4b   : > { %v1701_v12 = vadd.f32 %v1951_v10, %v1694_v11 }
 0xa4d   : > { %1702 = vst.msk [vmem:[%s732_s26] sm:$0xff] %vm763_vm1, %v1701_v12 }
 0xa4e PF: > { %s3221_s3 = sld [smem:[#allocation27_spill]]  ;;  %s3222_s27 = smov %s2583_s28 }
 0xa4f   : > { %s3223_s28 = smov %s3225_s30 }
 0xa54   : > { %s34_s29 = sadd.s32 1, %s3221_s3  }
 0xa55   : > { %p31_p7 = scmp.ge.s32.totalorder %s34_s29, 4  }
 0xa57   :  { %33 = sbr.rel (!%p31_p7) target bundleno = 16 (0x10), region = 171 }
 0xa5e   :  { %1728 = vsyncpa [#allocation6], 1 }
 0xa5f   :  { %1730 = vsyncpa [#allocation6 + $0x1], 1 }
 0xa60   :  { %1731 = vsyncpa [#allocation8], 1 }
 0xa61   :  { %1732 = vsyncpa [#allocation11], 1 }
 0xa62   :  { %1733 = vsyncpa [#allocation14], 1 }
 0xa63   :  { %1734 = vsyncpa [#allocation17], 1 }
 0xa64   :  { %1735 = vsyncpa [#allocation20], 1 }

// kernel: transformer_encoder_forward.3
= control target key start
LH: loop header
LB: loop body
LE: loop exit
PB: predicated region body
PF: predicated region fallthrough
CT: control target
= control target key end

     0   :  { %s2426_s0 = inlined_call_operand.vmem [shape: f32[2,8,32], index: 0, kind: input, shape index: {}]   ;;  %s2427_s1 = inlined_call_operand.vmem [shape: f32[2,1,8], index: 1, kind: input, shape index: {}]   ;;  %s2428_s2 = inlined_call_operand.vmem [shape: bf16[32,32], index: 2, kind: input, shape index: {}]   ;;  %s2429_s3 = inlined_call_operand.vmem [shape: f32[1,32], index: 3, kind: input, shape index: {}]   ;;  %s2430_s4 = inlined_call_operand.vmem [shape: bf16[32,32], index: 4, kind: input, shape index: {}]   ;;  %s2431_s5 = inlined_call_operand.vmem [shape: f32[1,32], index: 5, kind: input, shape index: {}]   ;;  %s2432_s6 = inlined_call_operand.vmem [shape: bf16[32,32], index: 6, kind: input, shape index: {}]   ;;  %s2433_s7 = inlined_call_operand.vmem [shape: f32[1,32], index: 7, kind: input, shape index: {}]   ;;  %s2434_s8 = inlined_call_operand.vmem [shape: bf16[32,32], index: 8, kind: input, shape index: {}]   ;;  %s2435_s9 = inlined_call_operand.vmem [shape: f32[1,32], index: 9, kind: input, shape index: {}]   ;;  %s2436_s10 = inlined_call_operand.vmem [shape: f32[1,32], index: 10, kind: input, shape index: {}]   ;;  %s2437_s11 = inlined_call_operand.vmem [shape: f32[1,32], index: 11, kind: input, shape index: {}]   ;;  %s2438_s12 = inlined_call_operand.vmem [shape: bf16[32,64], index: 12, kind: input, shape index: {}]   ;;  %s2439_s13 = inlined_call_operand.vmem [shape: f32[1,64], index: 13, kind: input, shape index: {}]   ;;  %s2440_s14 = inlined_call_operand.vmem [shape: bf16[64,32], index: 14, kind: input, shape index: {}]   ;;  %s2441_s15 = inlined_call_operand.vmem [shape: f32[1,32], index: 15, kind: input, shape index: {}]   ;;  %s2442_s16 = inlined_call_operand.vmem [shape: f32[1,32], index: 16, kind: input, shape index: {}]   ;;  %s2443_s17 = inlined_call_operand.vmem [shape: f32[1,32], index: 17, kind: input, shape index: {}]   ;;  %s2444_s18 = inlined_call_operand.hbm [shape: f32[2,8,32], index: 18, kind: output, shape index: {}]  }
   0x1   :  { %2451 = sst [smem:[#allocation14_spill]] %s2426_s0 }
   0x2   :  { %2452 = sst [smem:[#allocation15_spill]] %s2427_s1 }
   0x3   :  { %2453 = sst [smem:[#allocation16_spill]] %s2428_s2 }
   0x4   :  { %2454 = sst [smem:[#allocation17_spill]] %s2429_s3 }
   0x5   :  { %2455 = sst [smem:[#allocation18_spill]] %s2430_s4 }
   0x6   :  { %23 = vsyncpa [#allocation6], 0 }
   0x7   :  { %25 = vsyncpa [#allocation6 + $0x1], 0  ;;  %s2134_s27 = smov 0   ;;  %s2136_s28 = smov 0  }
   0x8   :  { %s2138_s29 = smov 0   ;;  %s2140_s30 = smov 0  }
   0x9   :  { %s2142_s0 = smov 0   ;;  %s2144_s19 = smov 0  }
   0xa LB: > { %2456 = sst [smem:[#allocation8_spill]] %s2008_s27  ;;  %s1663_s1 = sadd.s32 4294967295, %s2028_s19   ;;  %s2028_s19 = sphi %s2144_s19, %s31_s19   ;;  %s2024_s0 = sphi %s2142_s0, %s2478_s0   ;;  %s2020_s30 = sphi %s2140_s30, %s2474_s30   ;;  %s2016_s29 = sphi %s2138_s29, %s2473_s29   ;;  %s2012_s28 = sphi %s2136_s28, %s2477_s28   ;;  %s2008_s27 = sphi %s2134_s27, %s2476_s27  }
   0xb   : > { %2457 = sst [smem:[#allocation9_spill]] %s2016_s29  ;;  %s1664_s20 = sadd.s32 4294967294, %s2028_s19  }
   0xc   : > { %2458 = sst [smem:[#allocation10_spill]] %s2024_s0  ;;  %s43_s21 = sadd.s32 1, %s2024_s0 }
   0xd   : > { %s440_s22 = sadd.s32 1, %s2016_s29  ;;  %p45_p0 = scmp.ge.s32.totalorder %s43_s21, 2 }
   0xe   : > { %p450_p1 = scmp.ne.s32.totalorder %s2016_s29, %s2012_s28  ;;  %p451_p2 = scmp.eq.s32.totalorder %s1663_s1, 1 }
   0xf   : > { %p456_p3 = scmp.ne.s32.totalorder %s2012_s28, %s2008_s27  ;;  %s2480_s21 = smov (%p45_p0, %s43_s21), 0 }
  0x10   : > { %2459 = sst [smem:[#allocation11_spill]] %s2480_s21  ;;  %p2174_p4 = por %p451_p2, %p450_p1 }
  0x11   : > { %p457_p5 = scmp.eq.s32.totalorder %s1664_s20, 1  ;;  %s435_s23 = ssub.s32 %s2024_s0, %s2480_s21 }
  0x12   : > { %p1667_p6 = scmp.ge.s32.totalorder %s2028_s19, 1  ;;  %p438_p7 = scmp.eq.s32.totalorder %s435_s23, 0 }
  0x13   : > { %p2181_p8 = por %p457_p5, %p456_p3  ;;  %p536_p9 = scmp.lt.s32.totalorder %s2028_s19, 3 }
  0x14   : > { %s2187_s25 = scalar_select %p438_p7, %s2016_s29, %s440_s22  }
  0x15   : > { %s2461_s24 = scalar_select %p2181_p8, 1, 0 }
  0x16   : > { %2463 = sst [smem:[#allocation13_spill]] %s2187_s25  ;;  %p537_p10 = pnand %p1667_p6, %p536_p9 }
  0x17   : > { %2462 = sst [smem:[#allocation12_spill]] %s2461_s24  ;;  %s2464_s4 = sld [smem:[#allocation18_spill]] (!%p537_p10)  ;;  %v2030_v1 = vmov (!%p537_p10), 0.0   ;;  %vm2031_vm0 = vmmov (!%p537_p10), 0   ;;  %vm629_vm1 = vcmask (!%p537_p10), 261120   ;;  %v1918_v7 = vld [vmem:[%s2432_s6] sm:$0xff] (!%p537_p10)   ;;  %v820_v45 = vlaneseq (!%p537_p10) }
  0x18   : > { %540 = sbr.rel (%p537_p10) target bundleno = 2409 (0x969), region = 92  ;;  %1751 = vmatprep.subr.bf16.mxu0 (!%p537_p10), %v2030_v1  ;;  %1759 = vmatprep.subr.bf16.mxu1 (!%p537_p10), %v2030_v1  ;;  %p592_p11 = scmp.lt.s32.totalorder (!%p537_p10), %s2020_s30, 1  ;;  %v1919_v8 = vld [vmem:[%s2432_s6 + $0x8] sm:$0xff] (!%p537_p10)   ;;  %v1670_v9 = vld [vmem:[%s2431_s5] ss:$0 sm:$0xff] (!%p537_p10)  ;;  %vm737_vm2 = vcmask (!%p537_p10), 257024  }
  0x19   : > { %1755 = vmatprep.mubr.msk.bf16.mxu0 (!%p537_p10), %vm2031_vm0, %v2030_v1  ;;  %1763 = vmatprep.mubr.msk.bf16.mxu1 (!%p537_p10), %vm2031_vm0, %v2030_v1  ;;  %s2465_s0 = sld [smem:[#allocation16_spill]] (!%p537_p10)  ;;  %s2468_s3 = sld [smem:[#allocation17_spill]] (!%p537_p10)  ;;  %vm825_vm3 = vcmask (!%p537_p10), 64512   ;;  %v1674_v27 = vld [vmem:[%s2433_s7] ss:$0 sm:$0xff] (!%p537_p10)  ;;  %vm885_vm4 = vcmask (!%p537_p10), 1043456  }
  0x1a   : > { %1760 = vmatpush3.bf16.msra.mxu1 (!%p537_p10), %v1918_v7  ;;  %s2032_s20 = smov (!%p537_p10), 112   ;;  %s2033_s23 = smov (!%p537_p10), 120   ;;  %v821_v48 = vshrl.u32 (!%p537_p10), %v820_v45, 7  ;;  %vm1053_vm5 = vcmask (!%p537_p10), 130112   ;;  %vm1169_vm6 = vcmask (!%p537_p10), 195712   ;;  %vm1285_vm7 = vcmask (!%p537_p10), 261312  }
  0x1b   : > { %1761 = vmatprep.subr.bf16.mxu1 (!%p537_p10), %v2030_v1  ;;  %s2469_s24 = sld [smem:[#allocation15_spill]] (!%p537_p10)  ;;  %s2037_s27 = smov (!%p537_p10), 24   ;;  %vm1494_vm8 = vcmask (!%p537_p10), 523264  }
  0x1c   : > { %v822_v50 = vsub.s32 (!%p537_p10), 0, %v821_v48 }
  0x1d   : > { %v1914_v0 = vld [vmem:[%s2464_s4] sm:$0xff] (!%p537_p10)   ;;  %v1915_v2 = vld [vmem:[%s2464_s4 + $0x8] sm:$0xff] (!%p537_p10)   ;;  %s2467_s4 = sld [smem:[#allocation14_spill]] (!%p537_p10) }
  0x1e   : > { %1752 = vmatpush3.bf16.msra.mxu0 (!%p537_p10), %v1914_v0  ;;  %1762 = vmatpush3.bf16.msra.mxu1 (!%p537_p10), %v1919_v8 }
  0x1f   : > { %1753 = vmatprep.subr.bf16.mxu0 %v2030_v1  ;;  %s2204_s22 = scalar_select %p592_p11, %s2020_s30, 1  ;;  %v1916_v3 = vld [vmem:[%s2465_s0] sm:$0xff]   ;;  %1775 = vmatprep.subr.bf16.mxu1 %v2030_v1 }
  0x20   : > { %s2466_s25 = smov %s2465_s0  ;;  %v1678_v16 = vld [vmem:[%s2468_s3] ss:$0 sm:$0xff]  ;;  %s589_s0 = sand.u32 1, %s2012_s28  }
  0x21   : > { %s1669_s26 = sshll.u32 %s2204_s22, 3  ;;  %v1917_v6 = vld [vmem:[%s2466_s25 + $0x8] sm:$0xff]   ;;  %s1668_s21 = sshll.u32 %s589_s0, 3 }
  0x22   : > { %1754 = vmatpush3.bf16.msra.mxu0 %v1915_v2 }
  0x23   : > { %s595_s29 = scalar_lea.vmem %s2467_s4, %s1669_s26  ;;  %1767 = vmatprep.subr.bf16.mxu0 %v2030_v1  ;;  %s2034_s4 = smov 104  }
  0x24   : > { %v2214_v4 = vld [vmem:[%s595_s29] sm:$0xff]  ;;  %s598_s26 = scalar_lea.vmem %s2469_s24, %s2204_s22  ;;  %s2035_s22 = smov 8  }
  0x25   : > { %v605_v5 = vpack.c.bf16 %v2214_v4, %v2214_v4  ;;  %v814_v46 = vld [vmem:[%s598_s26] sm:$0x1]  ;;  %s2036_s29 = smov 16   ;;  %s1570_s24 = scalar_lea.sflag [#allocation6], %s589_s0 }
  0x26   : > { %v1682_v47 = vadd.f32 -1.0, %v814_v46 }
  0x27   : > { %1756 = vmatmul.mubr.msk.bf16.vlgmr.msra.gmra.mrb[0].mxu0 %vm629_vm1, %v605_v5  ;;  %1764 = vmatmul.mubr.msk.bf16.vlgmr.msra.gmra.mrb[0].mxu1 %vm629_vm1, %v605_v5 }
  0x28   : > { %1768 = vmatpush3.bf16.msra.mxu0 %v1916_v3  ;;  %1771 = vmatprep.mubr.msk.bf16.mxu0 %vm2031_vm0, %v2030_v1  ;;  %v816_v49 = vmul.f32 1e+09, %v1682_v47 }
  0x29   : > { %1769 = vmatprep.subr.bf16.mxu0 %v2030_v1  ;;  %1777 = vmatprep.mubr.msk.bf16.mxu1 %vm2031_vm0, %v2030_v1 }
  0x2a   : > { %v823_v51 = vrot.slane %v816_v49, %v822_v50 }
  0x2c   : > { %1770 = vmatpush3.bf16.msra.mxu0 %v1917_v6 }
  0x2d   : > { %1781 = vmatprep.subr.bf16.mxu0 %v2030_v1 }
  0x2f   : > { %1772 = vmatmul.mubr.msk.bf16.vlgmr.msra.gmra.mrb[4].mxu0 %vm629_vm1, %v605_v5 }
  0x30   : > { %1783 = vmatprep.mubr.msk.bf16.mxu0 %vm2031_vm0, %v2030_v1 }
  0xfa   : > { %v667_v10 = vpop.f32.mrb[0].mxu0  ;;  %v730_v28 = vpop.f32.mrb[0].mxu1 }
  0xfb   : > { %v668_v11 = vadd.f32 %v1670_v9, %v667_v10  ;;  %v1757_v12 = vpop.f32.mrb[1].mxu0  ;;  %v731_v29 = vadd.f32 %v1674_v27, %v730_v28  ;;  %v1765_v30 = vpop.f32.mrb[1].mxu1 }
  0xfc   : > { %v670_v13 = vpop.f32.mrb[2].mxu0  ;;  %v733_v31 = vpop.f32.mrb[2].mxu1 }
  0xfd   : > { %v736_v14 = vpack.c.bf16 %v668_v11, %v668_v11  ;;  %v1758_v15 = vpop.f32.mrb[3].mxu0  ;;  %v739_v32 = vpack.c.bf16 %v731_v29, %v731_v29  ;;  %v1766_v33 = vpop.f32.mrb[3].mxu1 }
  0xff   : > { %738 = vst.msk [vmem:[#allocation2] sm:$0xf] %vm737_vm2, %v736_v14  ;;  %740 = vst.msk [vmem:[#allocation3] sm:$0xf] %vm737_vm2, %v739_v32 }
 0x102   : > { %v806_v17 = vpop.f32.mrb[4].mxu0 }
 0x103   : > { %v807_v18 = vadd.f32 %v1678_v16, %v806_v17  ;;  %v1773_v19 = vpop.f32.mrb[5].mxu0 }
 0x104   : > { %v809_v20 = vpop.f32.mrb[6].mxu0 }
 0x105   : > { %v812_v21 = vmul.f32 0.35355338, %v807_v18  ;;  %v1774_v22 = vpop.f32.mrb[7].mxu0 }
 0x106   : > { %v817_v23 = vld [vmem:[#allocation2] sm:$0xf]  ;;  %v818_v34 = vld [vmem:[#allocation3] sm:$0xf] }
 0x107   : > { %v830_v24 = vsel %vm825_vm3, %v817_v23, 0  ;;  %v1685_v25 = vcombine.low %v817_v23, %v817_v23  ;;  %v813_v26 = vpack.c.bf16 %v812_v21, %v812_v21  ;;  %v887_v35 = vsel %vm885_vm4, %v818_v34, 0 }
 0x108   : > { %1776 = vmatpush3.bf16.xpose.msra.mxu1 %v830_v24  ;;  %1782 = vmatpush3.bf16.msra.mxu0 %v887_v35  ;;  %v1687_v14 = vcombine.low %v818_v34, %v818_v34 }
 0x109   : > { %1057 = vrot.lane.b32.xlu1 %v1685_v25, %s2032_s20  ;;  %938 = vrot.lane.b32.xlu0 %v1685_v25, %s2033_s23 }
 0x10a   : > { %1787 = vmatprep.subr.bf16.mxu1 %v2030_v1  ;;  %1793 = vmatprep.subr.bf16.mxu0 %v2030_v1 }
 0x10d   : > { %1055 = vrot.lane.b32.xlu1 %v813_v26, %s2032_s20  ;;  %933 = vrot.lane.b32.xlu0 %v813_v26, %s2033_s23 }
 0x10f   : > { %1778 = vmatmul.mubr.msk.bf16.vlgmr.msra.gmra.mrb[4].mxu1 %vm825_vm3, %v813_v26 }
 0x110   : > { %1789 = vmatprep.mubr.msk.bf16.mxu1 %vm2031_vm0, %v2030_v1 }
 0x111   : > { %1171 = vrot.lane.b32.xlu1 %v813_v26, %s2034_s4  ;;  %1173 = vrot.lane.b32.xlu0 %v1685_v25, %s2034_s4 }
 0x17b   : > { %v939_v36 = vpop.permute.xlu0 %938  ;;  %v1058_v38 = vpop.permute.xlu1 %1057 }
 0x17c   : > { %v944_v37 = vsel %vm825_vm3, %v939_v36, 0  ;;  %v1063_v40 = vsel %vm825_vm3, %v1058_v38, 0 }
 0x17d   : > { %1788 = vmatpush3.bf16.xpose.msra.mxu1 %v944_v37 }
 0x17e   : > { %1799 = vmatprep.subr.bf16.mxu1 %v2030_v1 }
 0x17f   : > { %v934_v39 = vpop.permute.xlu0 %933  ;;  %v1056_v42 = vpop.permute.xlu1 %1055 }
 0x183   : > { %v1174_v41 = vpop.permute.xlu0 %1173  ;;  %v1172_v44 = vpop.permute.xlu1 %1171 }
 0x184   : > { %1790 = vmatmul.mubr.msk.bf16.vlgmr.msra.gmra.mrb[8].mxu1 %vm825_vm3, %v934_v39  ;;  %v1179_v43 = vsel %vm825_vm3, %v1174_v41, 0 }
 0x185   : > { %1800 = vmatpush3.bf16.xpose.msra.mxu1 %v1063_v40  ;;  %1801 = vmatprep.mubr.msk.bf16.mxu1 %vm2031_vm0, %v2030_v1 }
 0x186   : > { %1811 = vmatprep.subr.bf16.mxu1 %v2030_v1 }
 0x18c   : > { %1802 = vmatmul.mubr.msk.bf16.vlgmr.msra.gmra.mrb[12].mxu1 %vm825_vm3, %v1056_v42 }
 0x18d   : > { %1812 = vmatpush3.bf16.xpose.msra.mxu1 %v1179_v43  ;;  %1813 = vmatprep.mubr.msk.bf16.mxu1 %vm2031_vm0, %v2030_v1 }
 0x18e   : > { %1823 = vmatprep.subr.bf16.mxu1 %v2030_v1 }
 0x194   : > { %1814 = vmatmul.mubr.msk.bf16.vlgmr.msra.gmra.mrb[16].mxu1 %vm825_vm3, %v1172_v44 }
 0x195   : > { %1827 = vmatprep.mubr.msk.bf16.mxu1 %vm2031_vm0, %v2030_v1 }
 0x1e2   : > { %v866_v52 = vpop.f32.mrb[4].mxu1 }
 0x1e3   : > { %v867_v53 = vadd.f32 %v866_v52, %v823_v51  ;;  %v1779_v54 = vpop.f32.mrb[5].mxu1 }
 0x1e4   : > { %v869_v55 = vpop.f32.mrb[6].mxu1 }
 0x1e5   : > { %v1780_v56 = vpop.f32.mrb[7].mxu1  ;;  %v872_v57 = vsel %vm825_vm3, %v867_v53, -inf }
 0x1e6   : > { %873 = vmax.xlane.f32.xlu0 %v872_v57 }
 0x257   : > { %v980_v58 = vpop.f32.mrb[8].mxu1 }
 0x258   : > { %v981_v59 = vadd.f32 %v980_v58, %v823_v51  ;;  %v1791_v60 = vpop.f32.mrb[9].mxu1 }
 0x259   : > { %v983_v61 = vpop.f32.mrb[10].mxu1 }
 0x25a   : > { %v1792_v62 = vpop.f32.mrb[11].mxu1  ;;  %v986_v63 = vsel %vm825_vm3, %v981_v59, -inf  ;;  %v1922_v61 = vld [vmem:[%s2434_s8] sm:$0xff]  }
 0x25b   : > { %987 = vmax.xlane.f32.xlu1 %v986_v63  ;;  %1824 = vmatpush3.bf16.msra.mxu1 %v1922_v61 }
 0x25c   : > { %1825 = vmatprep.subr.bf16.mxu1 %v2030_v1 }
 0x25f   : > { %v1099_v0 = vpop.f32.mrb[12].mxu1 }
 0x260   : > { %v1100_v2 = vadd.f32 %v1099_v0, %v823_v51  ;;  %v1803_v3 = vpop.f32.mrb[13].mxu1  ;;  %v1923_v0 = vld [vmem:[%s2434_s8 + $0x8] sm:$0xff]  }
 0x261   : > { %v1102_v5 = vpop.f32.mrb[14].mxu1  ;;  %1826 = vmatpush3.bf16.msra.mxu1 %v1923_v0 }
 0x262   : > { %v1804_v6 = vpop.f32.mrb[15].mxu1  ;;  %v1105_v7 = vsel %vm825_vm3, %v1100_v2, -inf  ;;  %1839 = vmatprep.subr.bf16.mxu1 %v2030_v1 }
 0x263   : > { %1106 = vmax.xlane.f32.xlu0 %v1105_v7 }
 0x267   : > { %v1215_v8 = vpop.f32.mrb[16].mxu1 }
 0x268   : > { %v1216_v9 = vadd.f32 %v1215_v8, %v823_v51  ;;  %v1815_v10 = vpop.f32.mrb[17].mxu1 }
 0x269   : > { %v1218_v11 = vpop.f32.mrb[18].mxu1 }
 0x26a   : > { %v1816_v12 = vpop.f32.mrb[19].mxu1  ;;  %v1221_v13 = vsel %vm825_vm3, %v1216_v9, -inf }
 0x26b   : > { %1222 = vmax.xlane.f32.xlu0 %v1221_v13 }
 0x26c   : > { %999 = vrot.lane.b32.xlu1 %v1687_v14, %s2033_s23  ;;  %s591_s23 = scalar_lea.vmem [#allocation5], %s1668_s21 }
 0x270   : > { %1231 = vrot.lane.b32.xlu1 %v1687_v14, %s2034_s4  ;;  %s1584_s4 = sshll.u32 %s591_s23, 4  ;;  %s2380_s4 = int_to_ptr.vmem [resolvable:$true] %s1584_s4 }
 0x271   : > { %s1950_s26 = scalar_lea.vmem %s2380_s4, 128 }
 0x272   : > { %p1951_p12 = scmp.ne.s32.totalorder %s2380_s4, %s1950_s26 }
 0x273   : > { %v874_v15 = vpop.xlane.xlu0 %873 }
 0x274   : > { %v875_v16 = vsub.f32 %v867_v53, %v874_v15  ;;  %p1952_p13 = pnand %p1951_p12, %p2174_p4 }
 0x276   : > { %v876_v17 = vmul.f32 1.442695, %v875_v16  ;;  %p1953_p0 = pneg %p1952_p13 }
 0x278   : > { %1930 = vpow2.f32 %v876_v17 }
 0x281   : > { %1115 = vrot.lane.b32.xlu0 %v1687_v14, %s2032_s20  ;;  %s1712_s20 = sshll.u32 %s2020_s30, 7  ;;  %s2038_s30 = smov [#allocation5]  }
 0x282   : > { %v1931_v18 = vpop.eup %1930  ;;  %s2378_s3 = scalar_lea.hbm %s2444_s18, %s1712_s20  ;;  %s1954_s21 = sshll.u32 %s2038_s30, 4  ;;  %s1955_s21 = int_to_ptr.vmem [resolvable:$false] %s1954_s21 }
 0x283   : > { %v881_v19 = vpack.c.bf16 %v1931_v18, %v1931_v18  ;;  %v878_v35 = vsel %vm825_vm3, %v1931_v18, 0.0  ;;  %v1693_v18 = vld [vmem:[%s2435_s9] ss:$0 sm:$0xff]  ;;  %p1957_p1 = scmp.lt.s32.totalorder %s2380_s4, %s1955_s21 }
 0x285   : > { %1784 = vmatmul.mubr.msk.bf16.vlgmr.msra.gmra.mrb[8].mxu0 %vm825_vm3, %v881_v19 }
 0x286   : > { %1795 = vmatprep.mubr.msk.bf16.mxu0 %vm2031_vm0, %v2030_v1 }
 0x2e8   : > { %v988_v20 = vpop.xlane.xlu1 %987 }
 0x2e9   : > { %v989_v21 = vsub.f32 %v981_v59, %v988_v20 }
 0x2eb   : > { %v990_v22 = vmul.f32 1.442695, %v989_v21 }
 0x2ec   : > { %v1000_v23 = vpop.permute.xlu1 %999 }
 0x2ed   : > { %1932 = vpow2.f32 %v990_v22  ;;  %v1005_v24 = vsel %vm885_vm4, %v1000_v23, 0 }
 0x2ee   : > { %1794 = vmatpush3.bf16.msra.mxu0 %v1005_v24 }
 0x2ef   : > { %1805 = vmatprep.subr.bf16.mxu0 %v2030_v1 }
 0x2f0   : > { %v1107_v25 = vpop.xlane.xlu0 %1106  ;;  %v1232_v38 = vpop.permute.xlu1 %1231 }
 0x2f1   : > { %v1108_v26 = vsub.f32 %v1100_v2, %v1107_v25  ;;  %v1237_v41 = vsel %vm885_vm4, %v1232_v38, 0  ;;  %v1697_v38 = vld [vmem:[%s2436_s10] ss:$0 sm:$0xff] }
 0x2f3   : > { %v1109_v27 = vmul.f32 1.442695, %v1108_v26 }
 0x2f5   : > { %1934 = vpow2.f32 %v1109_v27 }
 0x2f7   : > { %v1933_v28 = vpop.eup %1932 }
 0x2f8   : > { %v1223_v29 = vpop.xlane.xlu0 %1222  ;;  %v992_v30 = vsel %vm825_vm3, %v1933_v28, 0.0  ;;  %v995_v31 = vpack.c.bf16 %v1933_v28, %v1933_v28 }
 0x2f9   : > { %v1224_v32 = vsub.f32 %v1216_v9, %v1223_v29  ;;  %993 = vadd.xlane.f32.xlu1 %v992_v30 }
 0x2fa   : > { %1796 = vmatmul.mubr.msk.bf16.vlgmr.msra.gmra.mrb[12].mxu0 %vm825_vm3, %v995_v31  ;;  %v1924_v31 = vld [vmem:[%s2438_s12] sm:$0xff]  }
 0x2fb   : > { %v1225_v33 = vmul.f32 1.442695, %v1224_v32  ;;  %1807 = vmatprep.mubr.msk.bf16.mxu0 %vm2031_vm0, %v2030_v1  ;;  %v1925_v32 = vld [vmem:[%s2438_s12 + $0x8] sm:$0xff]  }
 0x2fc   : > { %v1116_v34 = vpop.permute.xlu0 %1115 }
 0x2fd   : > { %1936 = vpow2.f32 %v1225_v33  ;;  %v1121_v36 = vsel %vm885_vm4, %v1116_v34, 0  ;;  %879 = vadd.xlane.f32.xlu1 %v878_v35  ;;  %v1927_v33 = vld [vmem:[%s2440_s14 + $0x8] sm:$0xff]  }
 0x2fe   : > { %1806 = vmatpush3.bf16.msra.mxu0 %v1121_v36 }
 0x2ff   : > { %v1935_v37 = vpop.eup %1934  ;;  %1817 = vmatprep.subr.bf16.mxu0 %v2030_v1 }
 0x300   : > { %v1111_v39 = vsel %vm825_vm3, %v1935_v37, 0.0  ;;  %v1114_v40 = vpack.c.bf16 %v1935_v37, %v1935_v37 }
 0x301   : > { %1112 = vadd.xlane.f32.xlu0 %v1111_v39 }
 0x302   : > { %1808 = vmatmul.mubr.msk.bf16.vlgmr.msra.gmra.mrb[16].mxu0 %vm825_vm3, %v1114_v40  ;;  %v1698_v40 = vld [vmem:[%s2437_s11] ss:$0 sm:$0xff] }
 0x303   : > { %1818 = vmatpush3.bf16.msra.mxu0 %v1237_v41  ;;  %1819 = vmatprep.mubr.msk.bf16.mxu0 %vm2031_vm0, %v2030_v1 }
 0x304   : > { %1831 = vmatprep.subr.bf16.mxu0 %v2030_v1 }
 0x307   : > { %v1937_v42 = vpop.eup %1936 }
 0x308   : > { %v1227_v43 = vsel %vm825_vm3, %v1937_v42, 0.0  ;;  %v1230_v44 = vpack.c.bf16 %v1937_v42, %v1937_v42 }
 0x309   : > { %1228 = vadd.xlane.f32.xlu0 %v1227_v43 }
 0x30a   : > { %1820 = vmatmul.mubr.msk.bf16.vlgmr.msra.gmra.mrb[20].mxu0 %vm825_vm3, %v1230_v44  ;;  %v1928_v44 = vld [vmem:[%s2440_s14 + $0x10] sm:$0xff]  }
 0x30b   : > { %1835 = vmatprep.mubr.msk.bf16.mxu0 %vm2031_vm0, %v2030_v1  ;;  %1832 = vmatpush3.bf16.msra.mxu0 %v1924_v31 }
 0x30c   : > { %1833 = vmatprep.subr.bf16.mxu0 %v2030_v1 }
 0x30f   : > { %1834 = vmatpush3.bf16.msra.mxu0 %v1925_v32 }
 0x358   : > { %v923_v45 = vpop.f32.mrb[8].mxu0 }
 0x359   : > { %v1785_v46 = vpop.f32.mrb[9].mxu0 }
 0x35a   : > { %v926_v47 = vpop.f32.mrb[10].mxu0  ;;  %v1699_v46 = vld [vmem:[%s2439_s13] ss:$0 sm:$0xff] }
 0x35b   : > { %v1786_v48 = vpop.f32.mrb[11].mxu0 }
 0x386   : > { %v994_v49 = vpop.xlane.xlu1 %993 }
 0x38a   : > { %v880_v50 = vpop.xlane.xlu1 %879 }
 0x38b   : > { %1938 = vrcp.f32 %v880_v50 }
 0x38c   : > { %1940 = vrcp.f32 %v994_v49 }
 0x38e   : > { %v1113_v53 = vpop.xlane.xlu0 %1112 }
 0x38f   : > { %1942 = vrcp.f32 %v1113_v53 }
 0x395   : > { %v1939_v51 = vpop.eup %1938 }
 0x396   : > { %v930_v52 = vmul.f32 %v1939_v51, %v923_v45  ;;  %v1941_v54 = vpop.eup %1940  ;;  %v1229_v59 = vpop.xlane.xlu0 %1228  ;;  %v1929_v45 = vld [vmem:[%s2440_s14 + $0x18] sm:$0xff]  }
 0x397   : > { %1944 = vrcp.f32 %v1229_v59 }
 0x398   : > { %931 = vst.msk [vmem:[#allocation4] sm:$0xff] %vm825_vm3, %v930_v52 }
 0x399   : > { %v1943_v62 = vpop.eup %1942 }
 0x3a1   : > { %v1945_v7 = vpop.eup %1944 }
 0x3cd   : > { %v1041_v55 = vpop.f32.mrb[12].mxu0 }
 0x3ce   : > { %v1048_v56 = vmul.f32 %v1941_v54, %v1041_v55  ;;  %v1797_v57 = vpop.f32.mrb[13].mxu0 }
 0x3cf   : > { %v1044_v58 = vpop.f32.mrb[14].mxu0 }
 0x3d0   : > { %1050 = vrot.lane.b32.xlu0 %v1048_v56, %s2035_s22  ;;  %v1798_v60 = vpop.f32.mrb[15].mxu0  ;;  %s1956_s22 = scalar_lea.vmem %s1955_s21, 256 }
 0x3d1   : > { %p1958_p2 = scmp.lt.s32.totalorder %s1956_s22, %s1950_s26 }
 0x3d3   : > { %p1959_p3 = por %p1958_p2, %p1957_p1 }
 0x3d5   : > { %v1157_v63 = vpop.f32.mrb[16].mxu0  ;;  %p1960_p5 = pnand %p1959_p3, %p1953_p0 }
 0x3d6   : > { %v1164_v2 = vmul.f32 %v1943_v62, %v1157_v63  ;;  %v1809_v3 = vpop.f32.mrb[17].mxu0 }
 0x3d7   : > { %v1160_v5 = vpop.f32.mrb[18].mxu0 }
 0x3d8   : > { %1166 = vrot.lane.b32.xlu1 %v1164_v2, %s2036_s29  ;;  %v1810_v6 = vpop.f32.mrb[19].mxu0 }
 0x3dd   : > { %v1273_v8 = vpop.f32.mrb[20].mxu0 }
 0x3de   : > { %v1280_v9 = vmul.f32 %v1945_v7, %v1273_v8  ;;  %v1821_v10 = vpop.f32.mrb[21].mxu0  ;;  %v1709_v8 = vld [vmem:[%s2442_s16] ss:$0 sm:$0xff] }
 0x3df   : > { %v1276_v11 = vpop.f32.mrb[22].mxu0  ;;  %v1710_v10 = vld [vmem:[%s2443_s17] ss:$0 sm:$0xff] }
 0x3e0   : > { %1282 = vrot.lane.b32.xlu1 %v1280_v9, %s2037_s27  ;;  %v1822_v12 = vpop.f32.mrb[23].mxu0 }
 0x442   : > { %v1051_v13 = vpop.permute.xlu0 %1050 }
 0x443   : > { %1054 = vst.msk [vmem:[#allocation4] sm:$0xff] %vm1053_vm5, %v1051_v13 }
 0x44a   : > { %v1167_v14 = vpop.permute.xlu1 %1166 }
 0x44b   : > { %1170 = vst.msk [vmem:[#allocation4] sm:$0xff] %vm1169_vm6, %v1167_v14 }
 0x452   : > { %v1283_v15 = vpop.permute.xlu1 %1282 }
 0x453   : > { %1286 = vst.msk [vmem:[#allocation4] sm:$0xff] %vm1285_vm7, %v1283_v15 }
 0x45a   : > { %v1287_v16 = vld [vmem:[#allocation4] sm:$0xff] }
 0x45b   : > { %v1288_v17 = vpack.c.bf16 %v1287_v16, %v1287_v16 }
 0x45d   : > { %1828 = vmatmul.mubr.msk.bf16.vlgmr.msra.gmra.mrb[20].mxu1 %vm629_vm1, %v1288_v17 }
 0x45e   : > { %1847 = vmatprep.mubr.msk.bf16.mxu1 %vm2031_vm0, %v2030_v1 }
 0x530   : > { %v1349_v19 = vpop.f32.mrb[20].mxu1 }
 0x531   : > { %v1350_v20 = vadd.f32 %v1693_v18, %v1349_v19  ;;  %v1829_v21 = vpop.f32.mrb[21].mxu1 }
 0x532   : > { %v1352_v22 = vpop.f32.mrb[22].mxu1 }
 0x533   : > { %v1830_v23 = vpop.f32.mrb[23].mxu1  ;;  %v1355_v24 = vadd.f32 %v1350_v20, %v2214_v4  ;;  %v1926_v4 = vld [vmem:[%s2440_s14] sm:$0xff]  }
 0x534   : > { %1840 = vmatpush3.bf16.msra.mxu1 %v1926_v4 }
 0x535   : > { %v1358_v25 = vsel %vm629_vm1, %v1355_v24, 0.0  ;;  %1841 = vmatprep.subr.bf16.mxu1 %v2030_v1 }
 0x536   : > { %1359 = vadd.xlane.f32.xlu0 %v1358_v25 }
 0x538   : > { %1842 = vmatpush3.bf16.msra.mxu1 %v1927_v33 }
 0x539   : > { %1843 = vmatprep.subr.bf16.mxu1 %v2030_v1 }
 0x53c   : > { %1844 = vmatpush3.bf16.msra.mxu1 %v1928_v44 }
 0x53d   : > { %1845 = vmatprep.subr.bf16.mxu1 %v2030_v1  ;;  %v1703_v1 = vld [vmem:[%s2441_s15] ss:$0 sm:$0xff] }
 0x540   : > { %1846 = vmatpush3.bf16.msra.mxu1 %v1929_v45 }
 0x5c3   : > { %v1360_v26 = vpop.xlane.xlu0 %1359 }
 0x5c4   : > { %v1362_v27 = vmul.f32 0.03125, %v1360_v26 }
 0x5c6   : > { %v1363_v28 = vsub.f32 %v1355_v24, %v1362_v27 }
 0x5c8   : > { %v1364_v29 = vmul.f32 %v1363_v28, %v1363_v28 }
 0x5ca   : > { %v1365_v30 = vsel %vm629_vm1, %v1364_v29, 0.0 }
 0x5cb   : > { %1366 = vadd.xlane.f32.xlu1 %v1365_v30 }
 0x658   : > { %v1367_v34 = vpop.xlane.xlu1 %1366 }
 0x659   : > { %v1368_v35 = vmul.f32 0.03125, %v1367_v34 }
 0x65b   : > { %v1369_v36 = vadd.f32 1e-06, %v1368_v35 }
 0x65d   : > { %1946 = vrsqrt.f32 %v1369_v36 }
 0x667   : > { %v1947_v37 = vpop.eup %1946 }
 0x668   : > { %v1371_v39 = vmul.f32 %v1947_v37, %v1363_v28 }
 0x66a   : > { %v1378_v41 = vmul.f32 %v1697_v38, %v1371_v39 }
 0x66c   : > { %v1385_v42 = vadd.f32 %v1698_v40, %v1378_v41 }
 0x66e   : > { %v1386_v43 = vpack.c.bf16 %v1385_v42, %v1385_v42 }
 0x670   : > { %1836 = vmatmul.mubr.msk.bf16.vlgmr.msra.gmra.mrb[24].mxu0 %vm629_vm1, %v1386_v43 }
 0x743   : > { %v1447_v47 = vpop.f32.mrb[24].mxu0 }
 0x744   : > { %v1448_v48 = vadd.f32 %v1699_v46, %v1447_v47  ;;  %v1837_v49 = vpop.f32.mrb[25].mxu0 }
 0x745   : > { %v1450_v50 = vpop.f32.mrb[26].mxu0 }
 0x746   : > { %v1453_v51 = vmax.f32 %v1448_v48, 0.0  ;;  %v1838_v52 = vpop.f32.mrb[27].mxu0 }
 0x748   : > { %v1454_v53 = vpack.c.bf16 %v1453_v51, %v1453_v51 }
 0x74a   : > { %1848 = vmatmul.mubr.msk.bf16.vlgmr.msra.gmra.mrb[24].mxu1 %vm1494_vm8, %v1454_v53 }
 0x81d   : > { %v1532_v54 = vpop.f32.mrb[24].mxu1 }
 0x81e   : > { %v1533_v55 = vadd.f32 %v1703_v1, %v1532_v54  ;;  %v1849_v56 = vpop.f32.mrb[25].mxu1 }
 0x81f   : > { %v1535_v57 = vpop.f32.mrb[26].mxu1 }
 0x820   : > { %v1850_v58 = vpop.f32.mrb[27].mxu1  ;;  %v1538_v59 = vadd.f32 %v1533_v55, %v1385_v42 }
 0x822   : > { %v1541_v60 = vsel %vm629_vm1, %v1538_v59, 0.0 }
 0x823   : > { %1542 = vadd.xlane.f32.xlu0 %v1541_v60 }
 0x8b0   : > { %v1543_v61 = vpop.xlane.xlu0 %1542 }
 0x8b1   : > { %v1544_v62 = vmul.f32 0.03125, %v1543_v61 }
 0x8b3   : > { %v1545_v63 = vsub.f32 %v1538_v59, %v1544_v62 }
 0x8b5   : > { %v1546_v0 = vmul.f32 %v1545_v63, %v1545_v63 }
 0x8b7   : > { %v1547_v2 = vsel %vm629_vm1, %v1546_v0, 0.0 }
 0x8b8   : > { %1548 = vadd.xlane.f32.xlu0 %v1547_v2 }
 0x945   : > { %v1549_v3 = vpop.xlane.xlu0 %1548 }
 0x946   : > { %v1550_v5 = vmul.f32 0.03125, %v1549_v3 }
 0x948   : > { %v1551_v6 = vadd.f32 1e-06, %v1550_v5 }
 0x94a   : > { %1948 = vrsqrt.f32 %v1551_v6 }
 0x954   : > { %v1949_v7 = vpop.eup %1948 }
 0x955   : > { %v1553_v9 = vmul.f32 %v1949_v7, %v1545_v63 }
 0x957   : > { %v1560_v11 = vmul.f32 %v1709_v8, %v1553_v9 }
 0x959   : > { %v1567_v12 = vadd.f32 %v1710_v10, %v1560_v11 }
 0x95b   : > { %1568 = vst.msk [vmem:[%s591_s23] sm:$0xff] %vm629_vm1, %v1567_v12 }
 0x95c   : > { %1963 = shalt.err (!%p1960_p5)
}
 0x95d   : > { %s1964_s0 = scalar_lea.hbm %s2378_s3, 128  ;;  %s1968_s23 = scalar_lea.hbm %s2444_s18, 256 }
 0x95e   : > { %p1965_p6 = scmp.ne.s32.totalorder %s2378_s3, %s1964_s0  ;;  %p1969_p10 = scmp.lt.u32.totalorder %s2378_s3, %s2444_s18 }
 0x95f   : > { %p1970_p11 = scmp.lt.u32.totalorder %s1968_s23, %s1964_s0  ;;  %p1972_p13 = scmp.lt.u32.totalorder %s1964_s0, %s2378_s3 }
 0x960   : > { %p1966_p7 = pnand %p1965_p6, %p2174_p4 }
 0x961   : > { %p1971_p12 = por %p1970_p11, %p1969_p10 }
 0x962   : > { %p1967_p9 = pneg %p1966_p7 }
 0x963   : > { %p1973_p0 = por %p1972_p13, %p1971_p12 }
 0x965   : > { %p1974_p1 = pnand %p1973_p0, %p1967_p9 }
 0x967   : > { %1977 = shalt.err (!%p1974_p1)
}
 0x968   : > { %1851 = dma.vmem_to_hbm [thread:$0]  (%p2174_p4), %s2380_s4, 128, %s2378_s3, %s1570_s24  }
 0x969 PF: > { %s2470_s26 = sld [smem:[#allocation8_spill]]  ;;  %p1857_p2 = scmp.ge.s32.totalorder %s2028_s19, 2 }
 0x96b   : > { %p1854_p3 = pnand %p1857_p2, %p2181_p8 }
 0x96f   : > { %s1596_s21 = sand.u32 1, %s2470_s26  }
 0x970   : > { %s1597_s22 = scalar_lea.sflag [#allocation6], %s1596_s21 }
 0x971   : > { %2003 = dma.done.wait (!%p1854_p3), %s1597_s22, 128  }
 0x972   : > { %2005 = vsyncadd (!%p1854_p3), %s1597_s22, 4294967168  ;;  %s31_s19 = sadd.s32 1, %s2028_s19   ;;  %s2472_s0 = sld [smem:[#allocation9_spill]] }
 0x973   : > { %p28_p5 = scmp.ge.s32.totalorder %s31_s19, 4   ;;  %s2473_s29 = sld [smem:[#allocation13_spill]] }
 0x974   : > { %s2474_s30 = sld [smem:[#allocation10_spill]]  ;;  %s2475_s2 = sld [smem:[#allocation11_spill]] }
 0x975   : > { %s2476_s27 = smov %s2012_s28  ;;  %30 = sbr.rel (!%p28_p5) target bundleno = 10 (0xa), region = 135 }
 0x978   : > { %s2477_s28 = smov %s2472_s0 }
 0x97a   : > { %s2478_s0 = smov %s2475_s2 }
 0x97c   :  { %1602 = vsyncpa [#allocation6], 1 }
 0x97d   :  { %1604 = vsyncpa [#allocation6 + $0x1], 1 }

</bundles_post_ra>
